<compile_context>
chip_gen: v5e
topology: v5e:2x2
jax: 0.10.0
libtpu: 0.0.40
codegen_flags: <defaults>
</compile_context>

<pallas_src>
import functools

import jax
import jax.numpy as jnp
from jax.experimental import pallas as pl
from jax.experimental.pallas import tpu as pltpu


def _round_up(x, m):
    return ((x + m - 1) // m) * m


def _pad2d(x, rows, cols):
    return jnp.pad(x, ((0, rows - x.shape[0]), (0, cols - x.shape[1])))


def _choose_tile(n, max_tile=512):
    """Square A-tile size: as large as 512, shrunk for small graphs."""
    return min(max_tile, _round_up(n, 128))


def _vmem_limit_bytes(n_pad, fin_p, fout_p, tile, resident_h):
    a_bytes = 2 * tile * tile                      # int8 A tile, double-buffered
    if resident_h:
        h_bytes = 2 * n_pad * fin_p * 2            # resident bf16 H (x2 margin)
    else:
        h_bytes = 2 * 2 * tile * fin_p * 2         # two streamed bf16 H tiles
    w_bytes = 2 * 2 * fin_p * fout_p * 2           # W_self + W_neigh, bf16
    small = 2 * (tile * 4 + fout_p * 4)            # inv_deg + bias
    out_bytes = 2 * tile * fout_p * 4
    acc_bytes = tile * fin_p * 4
    need = a_bytes + h_bytes + w_bytes + small + out_bytes + acc_bytes
    # Floor at the 32 MiB scoped default, cap at 48 MiB so it is v7x-safe.
    return int(min(max(2 * need, 32 << 20), 48 << 20))


def _sage_layer_kernel(*refs, apply_relu, tile, resident_h):
    """One SAGEConv('mean') layer, tiled over (row tile i, contraction tile k).

    refs (resident_h=True):
      a_ref   [tile, tile]     int8 0/1 adjacency tile (edge j->i at [i, j])
      h_ref   [n_pad, fin_p]   VMEM-resident bf16 node features
      inv_ref [tile, 1]        f32 per-row 1/in-degree (0 for deg==0 rows)
      ws_ref  [fin_p, fout_p]  bf16 W_self
      wn_ref  [fin_p, fout_p]  bf16 W_neigh
      b_ref   [1, fout_p]      f32 bias
      o_ref   [tile, fout_p]   output tile
      acc_ref [tile, fin_p]    f32 neighbor-sum accumulator (scratch)
    refs (resident_h=False): h_ref is replaced by hk_ref (contraction tile)
      and hi_ref (self rows tile).
    """
    if resident_h:
        (a_ref, h_ref, inv_ref, ws_ref, wn_ref, b_ref, o_ref, acc_ref) = refs
    else:
        (a_ref, hk_ref, hi_ref, inv_ref, ws_ref, wn_ref, b_ref, o_ref,
         acc_ref) = refs

    i = pl.program_id(0)
    k = pl.program_id(1)

    @pl.when(k == 0)
    def _():
        acc_ref[...] = jnp.zeros_like(acc_ref)

    if resident_h:
        hk = h_ref[pl.ds(pl.multiple_of(k * tile, tile), tile), :]
    else:
        hk = hk_ref[...]

    # Neighbor-sum accumulation: (0/1 int8 -> bf16) A tile @ H tile, f32 acc.
    acc_ref[...] += jnp.dot(a_ref[...].astype(jnp.bfloat16), hk,
                            preferred_element_type=jnp.float32)

    @pl.when(k == pl.num_programs(1) - 1)
    def _():
        # Deferred mean: scale the f32 neighbor sum by the f32 inverse degree.
        h_neigh = (acc_ref[...] * inv_ref[...]).astype(jnp.bfloat16)
        if resident_h:
            h_self = h_ref[pl.ds(pl.multiple_of(i * tile, tile), tile), :]
        else:
            h_self = hi_ref[...]
        out = jnp.dot(h_self, ws_ref[...], preferred_element_type=jnp.float32)
        out = out + jnp.dot(h_neigh, wn_ref[...],
                            preferred_element_type=jnp.float32)
        out = out + b_ref[...]
        if apply_relu:
            out = jnp.maximum(out, 0.0)
        o_ref[...] = out.astype(o_ref.dtype)


def sage_layer(adj_i8, h, inv_deg, w_self, w_neigh, bias2d, *, apply_relu,
               out_dtype, tile):
    n_pad = adj_i8.shape[0]
    fin_p = h.shape[1]
    fout_p = w_self.shape[1]
    grid = (n_pad // tile, n_pad // tile)

    # Keep H resident in VMEM when it comfortably fits the budget.
    resident_h = (2 * n_pad * fin_p * 2) <= (16 << 20)

    kernel = functools.partial(_sage_layer_kernel, apply_relu=apply_relu,
                               tile=tile, resident_h=resident_h)

    if resident_h:
        h_specs = [pl.BlockSpec((n_pad, fin_p), lambda i, k: (0, 0))]
        h_args = (h,)
    else:
        h_specs = [pl.BlockSpec((tile, fin_p), lambda i, k: (k, 0)),
                   pl.BlockSpec((tile, fin_p), lambda i, k: (i, 0))]
        h_args = (h, h)

    in_specs = (
        [pl.BlockSpec((tile, tile), lambda i, k: (i, k))]          # A (int8)
        + h_specs                                                  # H
        + [pl.BlockSpec((tile, 1), lambda i, k: (i, 0)),           # 1/deg
           pl.BlockSpec((fin_p, fout_p), lambda i, k: (0, 0)),     # W_self
           pl.BlockSpec((fin_p, fout_p), lambda i, k: (0, 0)),     # W_neigh
           pl.BlockSpec((1, fout_p), lambda i, k: (0, 0))])        # bias

    vmem_limit = _vmem_limit_bytes(n_pad, fin_p, fout_p, tile, resident_h)

    return pl.pallas_call(
        kernel,
        out_shape=jax.ShapeDtypeStruct((n_pad, fout_p), out_dtype),
        grid_spec=pltpu.PrefetchScalarGridSpec(
            num_scalar_prefetch=0,
            grid=grid,
            in_specs=in_specs,
            out_specs=pl.BlockSpec((tile, fout_p), lambda i, k: (i, 0)),
            scratch_shapes=[pltpu.VMEM((tile, fin_p), jnp.float32)],
        ),
        compiler_params=pltpu.CompilerParams(
            dimension_semantics=("parallel", "arbitrary"),
            vmem_limit_bytes=vmem_limit,
        ),
    )(adj_i8, *h_args, inv_deg, w_self, w_neigh, bias2d)


def graphsage_forward(adj, in_feat, params, *, max_tile=512):
    """Full 4-layer GraphSAGE forward pass.

    adj     : [N, N] binary adjacency, adj[i, j] = 1 iff edge j -> i
    in_feat : [N, in_feats] node features
    params  : list of 4 dicts with 'w_self', 'w_neigh', 'bias'
    """
    n = adj.shape[0]
    tile = _choose_tile(n, max_tile)
    n_pad = _round_up(n, tile)
    fin = in_feat.shape[1]
    fin_p = _round_up(fin, 128)

    # A stored as int8 0/1; mean normalisation deferred to the f32 epilogue.
    adj_i8 = _pad2d(adj, n_pad, n_pad).astype(jnp.int8)
    deg = jnp.sum(adj.astype(jnp.float32), axis=1, keepdims=True)
    inv_deg = jnp.where(deg > 0, 1.0 / jnp.maximum(deg, 1.0), 0.0)
    inv_deg = _pad2d(inv_deg, n_pad, 1).astype(jnp.float32)

    h = _pad2d(in_feat, n_pad, fin_p).astype(jnp.bfloat16)

    n_layers = len(params)
    for li, p in enumerate(params):
        fi, fo = p["w_self"].shape
        fi_p = _round_up(fi, 128)
        fo_p = _round_up(fo, 128)
        w_self = _pad2d(p["w_self"], fi_p, fo_p).astype(jnp.bfloat16)
        w_neigh = _pad2d(p["w_neigh"], fi_p, fo_p).astype(jnp.bfloat16)
        bias2d = jnp.pad(p["bias"], (0, fo_p - fo)).reshape(1, fo_p)
        bias2d = bias2d.astype(jnp.float32)

        last = li == n_layers - 1
        h = sage_layer(
            adj_i8, h, inv_deg, w_self, w_neigh, bias2d,
            apply_relu=not last,                       # ReLU after conv1..3 only
            out_dtype=jnp.float32 if last else jnp.bfloat16,
            tile=tile,
        )

    f_out = params[-1]["w_self"].shape[1]
    return h[:n, :f_out]


def reference_forward(adj, in_feat, params):
    """Pure-JAX f32 reference (DGL SAGEConv('mean') semantics)."""
    deg = jnp.sum(adj, axis=1, keepdims=True)
    a_norm = jnp.where(deg > 0, adj / jnp.maximum(deg, 1.0), 0.0)
    h = in_feat
    for li, p in enumerate(params):
        h_neigh = a_norm @ h
        out = h @ p["w_self"] + h_neigh @ p["w_neigh"] + p["bias"]
        h = jnp.maximum(out, 0.0) if li < len(params) - 1 else out
    return h


def init_params(key, in_feats, h_feats):
    params = []
    dims = [(in_feats, h_feats), (h_feats, h_feats),
            (h_feats, h_feats), (h_feats, h_feats)]
    for (fi, fo) in dims:
        key, k1, k2 = jax.random.split(key, 3)
        scale = 1.0 / jnp.sqrt(jnp.float32(fi))
        params.append({
            "w_self": jax.random.normal(k1, (fi, fo), jnp.float32) * scale,
            "w_neigh": jax.random.normal(k2, (fi, fo), jnp.float32) * scale,
            "bias": jnp.zeros((fo,), jnp.float32),
        })
    return params


if __name__ == "__main__":
    key = jax.random.PRNGKey(0)
    N = 200          # number of graph nodes (padded to 256 inside)
    in_feats = 16
    h_feats = 32

    key, k_adj, k_feat, k_param = jax.random.split(key, 4)
    # Random sparse-ish directed graph with self-loops.
    adj = (jax.random.uniform(k_adj, (N, N)) < 0.1).astype(jnp.float32)
    adj = jnp.maximum(adj, jnp.eye(N, dtype=jnp.float32))
    in_feat = jax.random.normal(k_feat, (N, in_feats), jnp.float32)

    params = init_params(k_param, in_feats, h_feats)

    fwd = jax.jit(graphsage_forward)
    out = jax.block_until_ready(fwd(adj, in_feat, params))
    assert out.shape == (N, h_feats)

    ref = reference_forward(adj, in_feat, params)
    assert bool(jnp.all(jnp.isfinite(out)))
    assert bool(jnp.allclose(out, ref, rtol=2e-1, atol=2e-1)), (
        "kernel output diverges from f32 reference beyond bf16 tolerance")

    print("KERNEL_OK")
</pallas_src>

<mosaic_0001>
module attributes {stable_mosaic.version = 11 : i64} {
  func.func @_sage_layer_kernel(%arg0: i32, %arg1: i32, %arg2: memref<256x256xi8, #tpu.memory_space<vmem>>, %arg3: memref<256x128xbf16, #tpu.memory_space<vmem>>, %arg4: memref<256x1xf32, #tpu.memory_space<vmem>>, %arg5: memref<128x128xbf16, #tpu.memory_space<vmem>>, %arg6: memref<128x128xbf16, #tpu.memory_space<vmem>>, %arg7: memref<1x128xf32, #tpu.memory_space<vmem>>, %arg8: memref<256x128xbf16, #tpu.memory_space<vmem>>, %arg9: memref<256x128xf32, #tpu.memory_space<vmem>>) attributes {dimension_semantics = [#tpu.dimension_semantics<parallel>, #tpu.dimension_semantics<arbitrary>], iteration_bounds = array<i64: 1, 1>, scalar_prefetch = 0 : i64, scratch_operands = 1 : i64, tpu.core_type = #tpu.core_type<tc>, window_params = [{transform_indices = @transform_0, window_bounds = array<i64: 256, 256>}, {pipeline_mode = #tpu.pipeline_mode<synchronous>, transform_indices = @transform_1, window_bounds = array<i64: 256, 128>}, {transform_indices = @transform_2, window_bounds = array<i64: 256, 1>}, {pipeline_mode = #tpu.pipeline_mode<synchronous>, transform_indices = @transform_3, window_bounds = array<i64: 128, 128>}, {pipeline_mode = #tpu.pipeline_mode<synchronous>, transform_indices = @transform_4, window_bounds = array<i64: 128, 128>}, {pipeline_mode = #tpu.pipeline_mode<synchronous>, transform_indices = @transform_5, window_bounds = array<i64: 1, 128>}, {transform_indices = @transform_6, window_bounds = array<i64: 256, 128>}]} {
    %c0_i32 = arith.constant 0 : i32
    %0 = arith.cmpi eq, %arg1, %c0_i32 : i32
    %1 = arith.extui %0 : i1 to i32
    %c0_i32_0 = arith.constant 0 : i32
    %2 = arith.cmpi ne, %1, %c0_i32_0 : i32
    scf.if %2 {
      %cst_9 = arith.constant 0.000000e+00 : f32
      %16 = vector.broadcast %cst_9 : f32 to vector<256x128xf32>
      %c0_10 = arith.constant 0 : index
      %c0_11 = arith.constant 0 : index
      %17 = vector.load %arg9[%c0_10, %c0_11] : memref<256x128xf32, #tpu.memory_space<vmem>>, vector<256x128xf32>
      tpu.vector_store %arg9[%c0_10, %c0_11], %16 {strides = array<i32>} : memref<256x128xf32, #tpu.memory_space<vmem>>, vector<256x128xf32>,
    } else {
    }
    %c256_i32 = arith.constant 256 : i32
    %3 = arith.muli %arg1, %c256_i32 : i32
    %4 = tpu.assume_multiple %3, 256 : i32
    %5 = arith.index_cast %4 : i32 to index
    %c0 = arith.constant 0 : index
    %6 = vector.load %arg3[%5, %c0] : memref<256x128xbf16, #tpu.memory_space<vmem>>, vector<256x128xbf16>
    %c0_1 = arith.constant 0 : index
    %c0_2 = arith.constant 0 : index
    %7 = vector.load %arg9[%c0_1, %c0_2] : memref<256x128xf32, #tpu.memory_space<vmem>>, vector<256x128xf32>
    %c0_3 = arith.constant 0 : index
    %c0_4 = arith.constant 0 : index
    %8 = vector.load %arg2[%c0_3, %c0_4] : memref<256x256xi8, #tpu.memory_space<vmem>>, vector<256x256xi8>
    %9 = arith.sitofp %8 : vector<256x256xi8> to vector<256x256xbf16>
    %cst = arith.constant dense<0.000000e+00> : vector<256x128xf32>
    %10 = tpu.matmul %9, %6, %cst {dimension_numbers = #tpu.dot_dimension_numbers<[1], [0], [0], [1], [0, 0, 1, 1], [], []>} : vector<256x256xbf16>, vector<256x128xbf16>, vector<256x128xf32> -> vector<256x128xf32>
    %11 = arith.addf %7, %10 : vector<256x128xf32>
    %c0_5 = arith.constant 0 : index
    %c0_6 = arith.constant 0 : index
    %12 = vector.load %arg9[%c0_5, %c0_6] : memref<256x128xf32, #tpu.memory_space<vmem>>, vector<256x128xf32>
    tpu.vector_store %arg9[%c0_5, %c0_6], %11 {strides = array<i32>} : memref<256x128xf32, #tpu.memory_space<vmem>>, vector<256x128xf32>,
    %c0_i32_7 = arith.constant 0 : i32
    %13 = arith.cmpi eq, %arg1, %c0_i32_7 : i32
    %14 = arith.extui %13 : i1 to i32
    %c0_i32_8 = arith.constant 0 : i32
    %15 = arith.cmpi ne, %14, %c0_i32_8 : i32
    scf.if %15 {
      %c0_9 = arith.constant 0 : index
      %c0_10 = arith.constant 0 : index
      %16 = vector.load %arg9[%c0_9, %c0_10] : memref<256x128xf32, #tpu.memory_space<vmem>>, vector<256x128xf32>
      %c0_11 = arith.constant 0 : index
      %c0_12 = arith.constant 0 : index
      %17 = vector.load %arg4[%c0_11, %c0_12] : memref<256x1xf32, #tpu.memory_space<vmem>>, vector<256x1xf32>
      %18 = vector.broadcast %17 : vector<256x1xf32> to vector<256x128xf32>
      %19 = arith.mulf %16, %18 : vector<256x128xf32>
      %20 = arith.truncf %19 : vector<256x128xf32> to vector<256x128xbf16>
      %c256_i32_13 = arith.constant 256 : i32
      %21 = arith.muli %arg0, %c256_i32_13 : i32
      %22 = tpu.assume_multiple %21, 256 : i32
      %23 = arith.index_cast %22 : i32 to index
      %c0_14 = arith.constant 0 : index
      %24 = vector.load %arg3[%23, %c0_14] : memref<256x128xbf16, #tpu.memory_space<vmem>>, vector<256x128xbf16>
      %c0_15 = arith.constant 0 : index
      %c0_16 = arith.constant 0 : index
      %25 = vector.load %arg5[%c0_15, %c0_16] : memref<128x128xbf16, #tpu.memory_space<vmem>>, vector<128x128xbf16>
      %cst_17 = arith.constant dense<0.000000e+00> : vector<256x128xf32>
      %26 = tpu.matmul %24, %25, %cst_17 {dimension_numbers = #tpu.dot_dimension_numbers<[1], [0], [0], [1], [0, 0, 1, 1], [], []>} : vector<256x128xbf16>, vector<128x128xbf16>, vector<256x128xf32> -> vector<256x128xf32>
      %c0_18 = arith.constant 0 : index
      %c0_19 = arith.constant 0 : index
      %27 = vector.load %arg6[%c0_18, %c0_19] : memref<128x128xbf16, #tpu.memory_space<vmem>>, vector<128x128xbf16>
      %cst_20 = arith.constant dense<0.000000e+00> : vector<256x128xf32>
      %28 = tpu.matmul %20, %27, %cst_20 {dimension_numbers = #tpu.dot_dimension_numbers<[1], [0], [0], [1], [0, 0, 1, 1], [], []>} : vector<256x128xbf16>, vector<128x128xbf16>, vector<256x128xf32> -> vector<256x128xf32>
      %29 = arith.addf %26, %28 : vector<256x128xf32>
      %c0_21 = arith.constant 0 : index
      %c0_22 = arith.constant 0 : index
      %30 = vector.load %arg7[%c0_21, %c0_22] : memref<1x128xf32, #tpu.memory_space<vmem>>, vector<1x128xf32>
      %31 = vector.broadcast %30 : vector<1x128xf32> to vector<256x128xf32>
      %32 = arith.addf %29, %31 : vector<256x128xf32>
      %cst_23 = arith.constant 0.000000e+00 : f32
      %33 = vector.broadcast %cst_23 : f32 to vector<256x128xf32>
      %34 = arith.maximumf %32, %33 : vector<256x128xf32>
      %35 = arith.truncf %34 : vector<256x128xf32> to vector<256x128xbf16>
      %c0_24 = arith.constant 0 : index
      %c0_25 = arith.constant 0 : index
      %36 = vector.load %arg8[%c0_24, %c0_25] : memref<256x128xbf16, #tpu.memory_space<vmem>>, vector<256x128xbf16>
      tpu.vector_store %arg8[%c0_24, %c0_25], %35 {strides = array<i32>} : memref<256x128xbf16, #tpu.memory_space<vmem>>, vector<256x128xbf16>,
    } else {
    }
    return
  }
  func.func @transform_0(%arg0: i32, %arg1: i32) -> (i32, i32) {
    %c0_i32 = arith.constant 0 : i32
    return %arg0, %arg1 : i32, i32
  }
  func.func @transform_1(%arg0: i32, %arg1: i32) -> (i32, i32) {
    %c0_i32 = arith.constant 0 : i32
    %c0_i32_0 = arith.constant 0 : i32
    %c0_i32_1 = arith.constant 0 : i32
    return %c0_i32, %c0_i32_0 : i32, i32
  }
  func.func @transform_2(%arg0: i32, %arg1: i32) -> (i32, i32) {
    %c0_i32 = arith.constant 0 : i32
    %c0_i32_0 = arith.constant 0 : i32
    return %arg0, %c0_i32 : i32, i32
  }
  func.func @transform_3(%arg0: i32, %arg1: i32) -> (i32, i32) {
    %c0_i32 = arith.constant 0 : i32
    %c0_i32_0 = arith.constant 0 : i32
    %c0_i32_1 = arith.constant 0 : i32
    return %c0_i32, %c0_i32_0 : i32, i32
  }
  func.func @transform_4(%arg0: i32, %arg1: i32) -> (i32, i32) {
    %c0_i32 = arith.constant 0 : i32
    %c0_i32_0 = arith.constant 0 : i32
    %c0_i32_1 = arith.constant 0 : i32
    return %c0_i32, %c0_i32_0 : i32, i32
  }
  func.func @transform_5(%arg0: i32, %arg1: i32) -> (i32, i32) {
    %c0_i32 = arith.constant 0 : i32
    %c0_i32_0 = arith.constant 0 : i32
    %c0_i32_1 = arith.constant 0 : i32
    return %c0_i32, %c0_i32_0 : i32, i32
  }
  func.func @transform_6(%arg0: i32, %arg1: i32) -> (i32, i32) {
    %c0_i32 = arith.constant 0 : i32
    %c0_i32_0 = arith.constant 0 : i32
    return %arg0, %c0_i32 : i32, i32
  }
}

module attributes {stable_mosaic.version = 11 : i64} {
  func.func @_sage_layer_kernel(%arg0: i32, %arg1: i32, %arg2: memref<256x256xi8, #tpu.memory_space<vmem>>, %arg3: memref<256x128xbf16, #tpu.memory_space<vmem>>, %arg4: memref<256x1xf32, #tpu.memory_space<vmem>>, %arg5: memref<128x128xbf16, #tpu.memory_space<vmem>>, %arg6: memref<128x128xbf16, #tpu.memory_space<vmem>>, %arg7: memref<1x128xf32, #tpu.memory_space<vmem>>, %arg8: memref<256x128xf32, #tpu.memory_space<vmem>>, %arg9: memref<256x128xf32, #tpu.memory_space<vmem>>) attributes {dimension_semantics = [#tpu.dimension_semantics<parallel>, #tpu.dimension_semantics<arbitrary>], iteration_bounds = array<i64: 1, 1>, scalar_prefetch = 0 : i64, scratch_operands = 1 : i64, tpu.core_type = #tpu.core_type<tc>, window_params = [{transform_indices = @transform_0, window_bounds = array<i64: 256, 256>}, {pipeline_mode = #tpu.pipeline_mode<synchronous>, transform_indices = @transform_1, window_bounds = array<i64: 256, 128>}, {transform_indices = @transform_2, window_bounds = array<i64: 256, 1>}, {pipeline_mode = #tpu.pipeline_mode<synchronous>, transform_indices = @transform_3, window_bounds = array<i64: 128, 128>}, {pipeline_mode = #tpu.pipeline_mode<synchronous>, transform_indices = @transform_4, window_bounds = array<i64: 128, 128>}, {pipeline_mode = #tpu.pipeline_mode<synchronous>, transform_indices = @transform_5, window_bounds = array<i64: 1, 128>}, {transform_indices = @transform_6, window_bounds = array<i64: 256, 128>}]} {
    %c0_i32 = arith.constant 0 : i32
    %0 = arith.cmpi eq, %arg1, %c0_i32 : i32
    %1 = arith.extui %0 : i1 to i32
    %c0_i32_0 = arith.constant 0 : i32
    %2 = arith.cmpi ne, %1, %c0_i32_0 : i32
    scf.if %2 {
      %cst_9 = arith.constant 0.000000e+00 : f32
      %16 = vector.broadcast %cst_9 : f32 to vector<256x128xf32>
      %c0_10 = arith.constant 0 : index
      %c0_11 = arith.constant 0 : index
      %17 = vector.load %arg9[%c0_10, %c0_11] : memref<256x128xf32, #tpu.memory_space<vmem>>, vector<256x128xf32>
      tpu.vector_store %arg9[%c0_10, %c0_11], %16 {strides = array<i32>} : memref<256x128xf32, #tpu.memory_space<vmem>>, vector<256x128xf32>,
    } else {
    }
    %c256_i32 = arith.constant 256 : i32
    %3 = arith.muli %arg1, %c256_i32 : i32
    %4 = tpu.assume_multiple %3, 256 : i32
    %5 = arith.index_cast %4 : i32 to index
    %c0 = arith.constant 0 : index
    %6 = vector.load %arg3[%5, %c0] : memref<256x128xbf16, #tpu.memory_space<vmem>>, vector<256x128xbf16>
    %c0_1 = arith.constant 0 : index
    %c0_2 = arith.constant 0 : index
    %7 = vector.load %arg9[%c0_1, %c0_2] : memref<256x128xf32, #tpu.memory_space<vmem>>, vector<256x128xf32>
    %c0_3 = arith.constant 0 : index
    %c0_4 = arith.constant 0 : index
    %8 = vector.load %arg2[%c0_3, %c0_4] : memref<256x256xi8, #tpu.memory_space<vmem>>, vector<256x256xi8>
    %9 = arith.sitofp %8 : vector<256x256xi8> to vector<256x256xbf16>
    %cst = arith.constant dense<0.000000e+00> : vector<256x128xf32>
    %10 = tpu.matmul %9, %6, %cst {dimension_numbers = #tpu.dot_dimension_numbers<[1], [0], [0], [1], [0, 0, 1, 1], [], []>} : vector<256x256xbf16>, vector<256x128xbf16>, vector<256x128xf32> -> vector<256x128xf32>
    %11 = arith.addf %7, %10 : vector<256x128xf32>
    %c0_5 = arith.constant 0 : index
    %c0_6 = arith.constant 0 : index
    %12 = vector.load %arg9[%c0_5, %c0_6] : memref<256x128xf32, #tpu.memory_space<vmem>>, vector<256x128xf32>
    tpu.vector_store %arg9[%c0_5, %c0_6], %11 {strides = array<i32>} : memref<256x128xf32, #tpu.memory_space<vmem>>, vector<256x128xf32>,
    %c0_i32_7 = arith.constant 0 : i32
    %13 = arith.cmpi eq, %arg1, %c0_i32_7 : i32
    %14 = arith.extui %13 : i1 to i32
    %c0_i32_8 = arith.constant 0 : i32
    %15 = arith.cmpi ne, %14, %c0_i32_8 : i32
    scf.if %15 {
      %c0_9 = arith.constant 0 : index
      %c0_10 = arith.constant 0 : index
      %16 = vector.load %arg9[%c0_9, %c0_10] : memref<256x128xf32, #tpu.memory_space<vmem>>, vector<256x128xf32>
      %c0_11 = arith.constant 0 : index
      %c0_12 = arith.constant 0 : index
      %17 = vector.load %arg4[%c0_11, %c0_12] : memref<256x1xf32, #tpu.memory_space<vmem>>, vector<256x1xf32>
      %18 = vector.broadcast %17 : vector<256x1xf32> to vector<256x128xf32>
      %19 = arith.mulf %16, %18 : vector<256x128xf32>
      %20 = arith.truncf %19 : vector<256x128xf32> to vector<256x128xbf16>
      %c256_i32_13 = arith.constant 256 : i32
      %21 = arith.muli %arg0, %c256_i32_13 : i32
      %22 = tpu.assume_multiple %21, 256 : i32
      %23 = arith.index_cast %22 : i32 to index
      %c0_14 = arith.constant 0 : index
      %24 = vector.load %arg3[%23, %c0_14] : memref<256x128xbf16, #tpu.memory_space<vmem>>, vector<256x128xbf16>
      %c0_15 = arith.constant 0 : index
      %c0_16 = arith.constant 0 : index
      %25 = vector.load %arg5[%c0_15, %c0_16] : memref<128x128xbf16, #tpu.memory_space<vmem>>, vector<128x128xbf16>
      %cst_17 = arith.constant dense<0.000000e+00> : vector<256x128xf32>
      %26 = tpu.matmul %24, %25, %cst_17 {dimension_numbers = #tpu.dot_dimension_numbers<[1], [0], [0], [1], [0, 0, 1, 1], [], []>} : vector<256x128xbf16>, vector<128x128xbf16>, vector<256x128xf32> -> vector<256x128xf32>
      %c0_18 = arith.constant 0 : index
      %c0_19 = arith.constant 0 : index
      %27 = vector.load %arg6[%c0_18, %c0_19] : memref<128x128xbf16, #tpu.memory_space<vmem>>, vector<128x128xbf16>
      %cst_20 = arith.constant dense<0.000000e+00> : vector<256x128xf32>
      %28 = tpu.matmul %20, %27, %cst_20 {dimension_numbers = #tpu.dot_dimension_numbers<[1], [0], [0], [1], [0, 0, 1, 1], [], []>} : vector<256x128xbf16>, vector<128x128xbf16>, vector<256x128xf32> -> vector<256x128xf32>
      %29 = arith.addf %26, %28 : vector<256x128xf32>
      %c0_21 = arith.constant 0 : index
      %c0_22 = arith.constant 0 : index
      %30 = vector.load %arg7[%c0_21, %c0_22] : memref<1x128xf32, #tpu.memory_space<vmem>>, vector<1x128xf32>
      %31 = vector.broadcast %30 : vector<1x128xf32> to vector<256x128xf32>
      %32 = arith.addf %29, %31 : vector<256x128xf32>
      %c0_23 = arith.constant 0 : index
      %c0_24 = arith.constant 0 : index
      %33 = vector.load %arg8[%c0_23, %c0_24] : memref<256x128xf32, #tpu.memory_space<vmem>>, vector<256x128xf32>
      tpu.vector_store %arg8[%c0_23, %c0_24], %32 {strides = array<i32>} : memref<256x128xf32, #tpu.memory_space<vmem>>, vector<256x128xf32>,
    } else {
    }
    return
  }
  func.func @transform_0(%arg0: i32, %arg1: i32) -> (i32, i32) {
    %c0_i32 = arith.constant 0 : i32
    return %arg0, %arg1 : i32, i32
  }
  func.func @transform_1(%arg0: i32, %arg1: i32) -> (i32, i32) {
    %c0_i32 = arith.constant 0 : i32
    %c0_i32_0 = arith.constant 0 : i32
    %c0_i32_1 = arith.constant 0 : i32
    return %c0_i32, %c0_i32_0 : i32, i32
  }
  func.func @transform_2(%arg0: i32, %arg1: i32) -> (i32, i32) {
    %c0_i32 = arith.constant 0 : i32
    %c0_i32_0 = arith.constant 0 : i32
    return %arg0, %c0_i32 : i32, i32
  }
  func.func @transform_3(%arg0: i32, %arg1: i32) -> (i32, i32) {
    %c0_i32 = arith.constant 0 : i32
    %c0_i32_0 = arith.constant 0 : i32
    %c0_i32_1 = arith.constant 0 : i32
    return %c0_i32, %c0_i32_0 : i32, i32
  }
  func.func @transform_4(%arg0: i32, %arg1: i32) -> (i32, i32) {
    %c0_i32 = arith.constant 0 : i32
    %c0_i32_0 = arith.constant 0 : i32
    %c0_i32_1 = arith.constant 0 : i32
    return %c0_i32, %c0_i32_0 : i32, i32
  }
  func.func @transform_5(%arg0: i32, %arg1: i32) -> (i32, i32) {
    %c0_i32 = arith.constant 0 : i32
    %c0_i32_0 = arith.constant 0 : i32
    %c0_i32_1 = arith.constant 0 : i32
    return %c0_i32, %c0_i32_0 : i32, i32
  }
  func.func @transform_6(%arg0: i32, %arg1: i32) -> (i32, i32) {
    %c0_i32 = arith.constant 0 : i32
    %c0_i32_0 = arith.constant 0 : i32
    return %arg0, %c0_i32 : i32, i32
  }
}

</mosaic_0001>

<bundles_post_ra>
// kernel: graphsage_forward.7
= control target key start
LH: loop header
LB: loop body
LE: loop exit
PB: predicated region body
PF: predicated region fallthrough
CT: control target
= control target key end

     0   :  { %v1677_v0 = vmov 0   ;;  %s2143_s2 = inlined_call_operand.vmem [shape: f32[256,1], index: 2, kind: input, shape index: {}]   ;;  %s2144_s1 = inlined_call_operand.vmem [shape: bf16[256,128], index: 1, kind: input, shape index: {}]   ;;  %s2145_s0 = inlined_call_operand.vmem [shape: s8[256,256], index: 0, kind: input, shape index: {}]   ;;  %s2146_s3 = inlined_call_operand.vmem [shape: bf16[128,128], index: 3, kind: input, shape index: {}]   ;;  %s2147_s4 = inlined_call_operand.vmem [shape: bf16[128,128], index: 4, kind: input, shape index: {}]   ;;  %s2148_s5 = inlined_call_operand.vmem [shape: f32[1,128], index: 5, kind: input, shape index: {}]   ;;  %s2149_s6 = inlined_call_operand.vmem [shape: f32[256,128], index: 6, kind: output, shape index: {}]  }
   0x1   :  { %1674 = vset.pattern.permute.xlu1 %v1677_v0  ;;  %1673 = vset.pattern.permute.xlu0 %v1677_v0  ;;  %v679_v1 = vld [vmem:[%s2143_s2 + $0x10] sm:$0xff]  ;;  %v677_v2 = vld [vmem:[%s2143_s2] sm:$0xff]  ;;  %v1631_v3 = vld [vmem:[%s2144_s1 + $0x38] sm:$0xff] }
   0x2   :  { %721 = vperm.xlu1 %1674, %v679_v1   ;;  %711 = vperm.xlu0 %1673, %v677_v2   ;;  %v1639_v4 = vld [vmem:[%s2144_s1 + $0x78] sm:$0xff]  ;;  %v1630_v5 = vld [vmem:[%s2144_s1 + $0x30] sm:$0xff]  ;;  %v678_v8 = vld [vmem:[%s2143_s2 + $0x8] sm:$0xff] }
   0x3   :  { %400 = vmatpush.bf16.msra.mxu0 %v1631_v3  ;;  %1675 = vset.pattern.permute.xlu2 %v1677_v0  ;;  %v1638_v6 = vld [vmem:[%s2144_s1 + $0x70] sm:$0xff]  ;;  %v680_v7 = vld [vmem:[%s2143_s2 + $0x18] sm:$0xff]  ;;  %v1629_v9 = vld [vmem:[%s2144_s1 + $0x28] sm:$0xff] }
   0x4   :  { %489 = vmatpush.bf16.msra.mxu1 %v1639_v4  ;;  %v1637_v10 = vld [vmem:[%s2144_s1 + $0x68] sm:$0xff]  ;;  %v681_v11 = vld [vmem:[%s2143_s2 + $0x20] sm:$0xff]  ;;  %v684_v15 = vld [vmem:[%s2143_s2 + $0x38] sm:$0xff] }
   0x5   :  { %731 = vperm.xlu2 %1675, %v681_v11   ;;  %v1628_v12 = vld [vmem:[%s2144_s1 + $0x20] sm:$0xff]  ;;  %v682_v14 = vld [vmem:[%s2143_s2 + $0x28] sm:$0xff]  ;;  %v683_v16 = vld [vmem:[%s2143_s2 + $0x30] sm:$0xff] }
   0x6   :  { %v1636_v13 = vld [vmem:[%s2144_s1 + $0x60] sm:$0xff]  ;;  %v1627_v17 = vld [vmem:[%s2144_s1 + $0x18] sm:$0xff]  ;;  %v1626_v19 = vld [vmem:[%s2144_s1 + $0x10] sm:$0xff] }
   0x7   :  { %401 = vmatpush.bf16.msra.mxu0 %v1630_v5  ;;  %v1635_v18 = vld [vmem:[%s2144_s1 + $0x58] sm:$0xff]  ;;  %v1634_v20 = vld [vmem:[%s2144_s1 + $0x50] sm:$0xff]  ;;  %v128_v21 = vld [vmem:[%s2145_s0] sm:$0xff] }
   0x8   :  { %490 = vmatpush.bf16.msra.mxu1 %v1638_v6  ;;  %v129_v22 = vld [vmem:[%s2145_s0 + $0x8] sm:$0xff]  ;;  %v685_v23 = vld [vmem:[%s2143_s2 + $0x40] sm:$0xff]  ;;  %v687_v24 = vld [vmem:[%s2143_s2 + $0x50] sm:$0xff]  ;;  %v144_v27 = vunpack.c.0.s8 %v128_v21  ;;  %v146_v28 = vunpack.c.1.s8 %v128_v21  ;;  %v148_v46 = vunpack.c.2.s8 %v128_v21  ;;  %v150_v47 = vunpack.c.3.s8 %v128_v21 }
   0x9   :  { %v686_v25 = vld [vmem:[%s2143_s2 + $0x48] sm:$0xff]  ;;  %v145_v29 = vunpack.c.0.s8 %v129_v22  ;;  %v147_v30 = vunpack.c.1.s8 %v129_v22  ;;  %v1624_v32 = vld [vmem:[%s2144_s1] sm:$0xff]  ;;  %v688_v38 = vld [vmem:[%s2143_s2 + $0x58] sm:$0xff]  ;;  %v149_v48 = vunpack.c.2.s8 %v129_v22  ;;  %v151_v49 = vunpack.c.3.s8 %v129_v22 }
   0xa   :  { %726 = vperm.xlu1 %1674, %v680_v7   ;;  %716 = vperm.xlu0 %1673, %v678_v8   ;;  %v1625_v26 = vld [vmem:[%s2144_s1 + $0x8] sm:$0xff]  ;;  %v208_v33 = vcvt.s32.f32 %v144_v27  ;;  %v210_v34 = vcvt.s32.f32 %v146_v28  ;;  %v1632_v37 = vld [vmem:[%s2144_s1 + $0x40] sm:$0xff]  ;;  %v691_v43 = vld [vmem:[%s2143_s2 + $0x70] sm:$0xff]  ;;  %v212_v50 = vcvt.s32.f32 %v148_v46  ;;  %v214_v51 = vcvt.s32.f32 %v150_v47 }
   0xb   :  { %402 = vmatpush.bf16.msra.mxu0 %v1629_v9  ;;  %v1633_v31 = vld [vmem:[%s2144_s1 + $0x48] sm:$0xff]  ;;  %v209_v35 = vcvt.s32.f32 %v145_v29  ;;  %v211_v36 = vcvt.s32.f32 %v147_v30  ;;  %v689_v40 = vld [vmem:[%s2143_s2 + $0x60] sm:$0xff]  ;;  %v692_v45 = vld [vmem:[%s2143_s2 + $0x78] sm:$0xff]  ;;  %v213_v52 = vcvt.s32.f32 %v149_v48  ;;  %v215_v53 = vcvt.s32.f32 %v151_v49 }
   0xc   :  { %491 = vmatpush.bf16.msra.mxu1 %v1637_v10  ;;  %v690_v39 = vld [vmem:[%s2143_s2 + $0x68] sm:$0xff]  ;;  %v272_v41 = vpack.c.bf16 %v210_v34, %v208_v33  ;;  %v693_v44 = vld [vmem:[%s2143_s2 + $0x80] sm:$0xff]  ;;  %v696_v55 = vld [vmem:[%s2143_s2 + $0x98] sm:$0xff]  ;;  %v274_v57 = vpack.c.bf16 %v214_v51, %v212_v50 }
   0xd   :  { %736 = vperm.xlu2 %1675, %v682_v14   ;;  %v273_v42 = vpack.c.bf16 %v211_v36, %v209_v35  ;;  %v694_v54 = vld [vmem:[%s2143_s2 + $0x88] sm:$0xff]  ;;  %v695_v56 = vld [vmem:[%s2143_s2 + $0x90] sm:$0xff]  ;;  %v275_v58 = vpack.c.bf16 %v215_v53, %v213_v52  ;;  %v131_v60 = vld [vmem:[%s2145_s0 + $0x18] sm:$0xff] }
   0xe   :  { %v130_v59 = vld [vmem:[%s2145_s0 + $0x10] sm:$0xff]  ;;  %v697_v61 = vld [vmem:[%s2143_s2 + $0xa0] sm:$0xff]  ;;  %v698_v63 = vld [vmem:[%s2143_s2 + $0xa8] sm:$0xff]  ;;  %v153_v2 = vunpack.c.0.s8 %v131_v60  ;;  %v155_v3 = vunpack.c.1.s8 %v131_v60 }
   0xf   :  { %403 = vmatpush.bf16.msra.mxu0 %v1628_v12  ;;  %v699_v62 = vld [vmem:[%s2143_s2 + $0xb0] sm:$0xff]  ;;  %v152_v0 = vunpack.c.0.s8 %v130_v59  ;;  %v154_v1 = vunpack.c.1.s8 %v130_v59  ;;  %v700_v8 = vld [vmem:[%s2143_s2 + $0xb8] sm:$0xff]  ;;  %v702_v9 = vld [vmem:[%s2143_s2 + $0xc8] sm:$0xff] }
  0x10   :  { %492 = vmatpush.bf16.msra.mxu1 %v1636_v13  ;;  %v217_v6 = vcvt.s32.f32 %v153_v2  ;;  %v219_v7 = vcvt.s32.f32 %v155_v3  ;;  %v701_v10 = vld [vmem:[%s2143_s2 + $0xc0] sm:$0xff]  ;;  %v703_v13 = vld [vmem:[%s2143_s2 + $0xd0] sm:$0xff]  ;;  %v133_v30 = vld [vmem:[%s2145_s0 + $0x28] sm:$0xff] }
  0x11   :  { %v216_v4 = vcvt.s32.f32 %v152_v0  ;;  %v218_v5 = vcvt.s32.f32 %v154_v1  ;;  %v705_v14 = vld [vmem:[%s2143_s2 + $0xe0] sm:$0xff]  ;;  %v161_v33 = vunpack.c.0.s8 %v133_v30  ;;  %v163_v34 = vunpack.c.1.s8 %v133_v30  ;;  %v1671_v51 = vld [vmem:[%s2147_s4 + $0x38] sm:$0xff]  ;;  %v1661_v52 = vld [vmem:[%s2146_s3 + $0x28] sm:$0xff] }
  0x12   :  { %746 = vperm.xlu1 %1674, %v684_v15   ;;  %741 = vperm.xlu0 %1673, %v683_v16   ;;  %v277_v12 = vpack.c.bf16 %v219_v7, %v217_v6  ;;  %v704_v15 = vld [vmem:[%s2143_s2 + $0xd8] sm:$0xff]  ;;  %v156_v16 = vunpack.c.2.s8 %v130_v59  ;;  %v132_v29 = vld [vmem:[%s2145_s0 + $0x20] sm:$0xff]  ;;  %v167_v46 = vunpack.c.3.s8 %v133_v30  ;;  %v1658_v2 = vld [vmem:[%s2146_s3 + $0x10] sm:$0xff] }
  0x13   :  { %404 = vmatpush.bf16.msra.mxu0 %v1627_v17  ;;  %v276_v11 = vpack.c.bf16 %v218_v5, %v216_v4  ;;  %v158_v17 = vunpack.c.3.s8 %v130_v59  ;;  %1034 = vmatpush.bf16.msra.mxu2 %v1671_v51  ;;  %v1669_v59 = vld [vmem:[%s2147_s4 + $0x28] sm:$0xff]  ;;  %v1668_v1 = vld [vmem:[%s2147_s4 + $0x20] sm:$0xff]  ;;  %v1667_v7 = vld [vmem:[%s2147_s4 + $0x18] sm:$0xff] }
  0x14   :  { %493 = vmatpush.bf16.msra.mxu1 %v1635_v18  ;;  %v157_v18 = vunpack.c.2.s8 %v131_v60  ;;  %v231_v50 = vcvt.s32.f32 %v167_v46 }
  0x15   :  { %751 = vperm.xlu2 %1675, %v685_v23   ;;  %v222_v21 = vcvt.s32.f32 %v158_v17 }
  0x16   :  { %v221_v22 = vcvt.s32.f32 %v157_v18 }
  0x17   :  { %405 = vmatpush.bf16.msra.mxu0 %v1626_v19  ;;  %v159_v19 = vunpack.c.3.s8 %v131_v60  ;;  %v1659_v60 = vld [vmem:[%s2146_s3 + $0x18] sm:$0xff] }
  0x18   :  { %494 = vmatpush.bf16.msra.mxu1 %v1634_v20  ;;  %v220_v20 = vcvt.s32.f32 %v156_v16 }
  0x19   :  { %v223_v23 = vcvt.s32.f32 %v159_v19  ;;  %v1664_v19 = vld [vmem:[%s2147_s4] sm:$0xff] }
  0x1a   :  { %761 = vperm.xlu1 %1674, %v687_v24   ;;  %756 = vperm.xlu0 %1673, %v686_v25   ;;  %v706_v24 = vld [vmem:[%s2143_s2 + $0xe8] sm:$0xff]  ;;  %v708_v25 = vld [vmem:[%s2143_s2 + $0xf8] sm:$0xff]  ;;  %v278_v27 = vpack.c.bf16 %v222_v21, %v220_v20 }
  0x1b   :  { %406 = vmatpush.bf16.msra.mxu0 %v1625_v26  ;;  %v707_v26 = vld [vmem:[%s2143_s2 + $0xf0] sm:$0xff]  ;;  %v279_v28 = vpack.c.bf16 %v223_v23, %v221_v22 }
  0x1c   :  { %495 = vmatpush.bf16.msra.mxu1 %v1633_v31  ;;  %v160_v31 = vunpack.c.0.s8 %v132_v29 }
  0x1d   :  { %766 = vperm.xlu2 %1675, %v688_v38   ;;  %v227_v38 = vcvt.s32.f32 %v163_v34 }
  0x1e   :  { %v224_v35 = vcvt.s32.f32 %v160_v31 }
  0x1f   :  { %407 = vmatpush.bf16.msra.mxu0 %v1624_v32  ;;  %v162_v32 = vunpack.c.1.s8 %v132_v29 }
  0x20   :  { %496 = vmatpush.bf16.msra.mxu1 %v1632_v37  ;;  %v225_v37 = vcvt.s32.f32 %v161_v33 }
  0x21   :  { %v226_v36 = vcvt.s32.f32 %v162_v32 }
  0x22   :  { %776 = vperm.xlu1 %1674, %v690_v39   ;;  %771 = vperm.xlu0 %1673, %v689_v40   ;;  %v281_v40 = vpack.c.bf16 %v227_v38, %v225_v37 }
  0x23   :  { %408 = vmatmul.bf16.vlgmr.msra.gmra.mxu0 %v272_v41  ;;  %497 = vmatmul.bf16.vlgmr.msra.gmra.mxu1 %v273_v42  ;;  %v280_v39 = vpack.c.bf16 %v226_v36, %v224_v35  ;;  %v1663_v41 = vld [vmem:[%s2146_s3 + $0x38] sm:$0xff]  ;;  %v1662_v42 = vld [vmem:[%s2146_s3 + $0x30] sm:$0xff] }
  0x24   :  { %1267 = vmatpush.bf16.msra.mxu3 %v1663_v41 }
  0x25   :  { %781 = vperm.xlu2 %1675, %v691_v43   ;;  %v164_v43 = vunpack.c.2.s8 %v132_v29 }
  0x27   :  { %v228_v47 = vcvt.s32.f32 %v164_v43 }
  0x28   :  { %1268 = vmatpush.bf16.msra.mxu3 %v1662_v42  ;;  %v1642_v42 = vld [vmem:[%s2144_s1 + $0x10] sm:$0xff] }
  0x2a   :  { %791 = vperm.xlu1 %1674, %v693_v44   ;;  %786 = vperm.xlu0 %1673, %v692_v45   ;;  %v166_v44 = vunpack.c.3.s8 %v132_v29  ;;  %v165_v45 = vunpack.c.2.s8 %v133_v30 }
  0x2c   :  { %v230_v48 = vcvt.s32.f32 %v166_v44  ;;  %v229_v49 = vcvt.s32.f32 %v165_v45  ;;  %1269 = vmatpush.bf16.msra.mxu3 %v1661_v52 }
  0x2d   :  { %796 = vperm.xlu2 %1675, %v694_v54  }
  0x2e   :  { %v282_v53 = vpack.c.bf16 %v230_v48, %v228_v47  ;;  %v283_v54 = vpack.c.bf16 %v231_v50, %v229_v49 }
  0x32   :  { %806 = vperm.xlu1 %1674, %v696_v55   ;;  %801 = vperm.xlu0 %1673, %v695_v56   ;;  %v1670_v55 = vld [vmem:[%s2147_s4 + $0x30] sm:$0xff]  ;;  %v1660_v56 = vld [vmem:[%s2146_s3 + $0x20] sm:$0xff] }
  0x33   :  { %413 = vmatmul.bf16.gmra.mxu0 %v274_v57  ;;  %502 = vmatmul.bf16.gmra.mxu1 %v275_v58  ;;  %v134_v57 = vld [vmem:[%s2145_s0 + $0x30] sm:$0xff]  ;;  %v135_v58 = vld [vmem:[%s2145_s0 + $0x38] sm:$0xff] }
  0x34   :  { %1035 = vmatpush.bf16.msra.mxu2 %v1670_v55  ;;  %1270 = vmatpush.bf16.msra.mxu3 %v1660_v56  ;;  %v171_v0 = vunpack.c.1.s8 %v135_v58  ;;  %v174_v16 = vunpack.c.3.s8 %v134_v57  ;;  %v173_v17 = vunpack.c.2.s8 %v135_v58  ;;  %v175_v18 = vunpack.c.3.s8 %v135_v58 }
  0x35   :  { %811 = vperm.xlu2 %1675, %v697_v61   ;;  %v168_v61 = vunpack.c.0.s8 %v134_v57 }
  0x36   :  { %v235_v6 = vcvt.s32.f32 %v171_v0  ;;  %v238_v21 = vcvt.s32.f32 %v174_v16  ;;  %v237_v22 = vcvt.s32.f32 %v173_v17  ;;  %v239_v23 = vcvt.s32.f32 %v175_v18  ;;  %v138_v0 = vld [vmem:[%s2145_s0 + $0x50] sm:$0xff] }
  0x37   :  { %v232_v3 = vcvt.s32.f32 %v168_v61 }
  0x38   :  { %1036 = vmatpush.bf16.msra.mxu2 %v1669_v59  ;;  %1271 = vmatpush.bf16.msra.mxu3 %v1659_v60 }
  0x3a   :  { %821 = vperm.xlu1 %1674, %v699_v62   ;;  %816 = vperm.xlu0 %1673, %v698_v63   ;;  %v170_v62 = vunpack.c.1.s8 %v134_v57  ;;  %v169_v63 = vunpack.c.0.s8 %v135_v58 }
  0x3c   :  { %v234_v4 = vcvt.s32.f32 %v170_v62  ;;  %v233_v5 = vcvt.s32.f32 %v169_v63  ;;  %1037 = vmatpush.bf16.msra.mxu2 %v1668_v1  ;;  %1272 = vmatpush.bf16.msra.mxu3 %v1658_v2  ;;  %v1643_v1 = vld [vmem:[%s2144_s1 + $0x18] sm:$0xff] }
  0x3d   :  { %826 = vperm.xlu2 %1675, %v700_v8   ;;  %v1657_v8 = vld [vmem:[%s2146_s3 + $0x8] sm:$0xff]  ;;  %v139_v2 = vld [vmem:[%s2145_s0 + $0x58] sm:$0xff] }
  0x40   :  { %1038 = vmatpush.bf16.msra.mxu2 %v1667_v7  ;;  %1273 = vmatpush.bf16.msra.mxu3 %v1657_v8  ;;  %v187_v7 = vunpack.c.1.s8 %v139_v2 }
  0x42   :  { %836 = vperm.xlu1 %1674, %v702_v9   ;;  %831 = vperm.xlu0 %1673, %v701_v10   ;;  %v284_v9 = vpack.c.bf16 %v234_v4, %v232_v3  ;;  %v285_v10 = vpack.c.bf16 %v235_v6, %v233_v5  ;;  %v184_v3 = vunpack.c.0.s8 %v138_v0  ;;  %v186_v4 = vunpack.c.1.s8 %v138_v0 }
  0x43   :  { %418 = vmatmul.bf16.gmra.mxu0 %v276_v11  ;;  %507 = vmatmul.bf16.gmra.mxu1 %v277_v12  ;;  %v1666_v11 = vld [vmem:[%s2147_s4 + $0x10] sm:$0xff]  ;;  %v1656_v12 = vld [vmem:[%s2146_s3] sm:$0xff]  ;;  %v185_v6 = vunpack.c.0.s8 %v139_v2  ;;  %v251_v17 = vcvt.s32.f32 %v187_v7 }
  0x44   :  { %1039 = vmatpush.bf16.msra.mxu2 %v1666_v11  ;;  %1274 = vmatpush.bf16.msra.mxu3 %v1656_v12  ;;  %v248_v12 = vcvt.s32.f32 %v184_v3 }
  0x45   :  { %841 = vperm.xlu2 %1675, %v703_v13   ;;  %v1640_v13 = vld [vmem:[%s2144_s1] sm:$0xff]  ;;  %v249_v16 = vcvt.s32.f32 %v185_v6 }
  0x47   :  { %1275 = vmatmul.bf16.vlgmr.msra.gmra.mxu3 %v1640_v13  ;;  %v250_v13 = vcvt.s32.f32 %v186_v4 }
  0x4a   :  { %851 = vperm.xlu1 %1674, %v705_v14   ;;  %846 = vperm.xlu0 %1673, %v704_v15   ;;  %v1665_v14 = vld [vmem:[%s2147_s4 + $0x8] sm:$0xff]  ;;  %v172_v15 = vunpack.c.2.s8 %v134_v57 }
  0x4b   :  { %1040 = vmatpush.bf16.msra.mxu2 %v1665_v14 }
  0x4c   :  { %v236_v20 = vcvt.s32.f32 %v172_v15 }
  0x4d   :  { %856 = vperm.xlu2 %1675, %v706_v24  }
  0x4e   :  { %v286_v24 = vpack.c.bf16 %v238_v21, %v236_v20  ;;  %v292_v20 = vpack.c.bf16 %v250_v13, %v248_v12  ;;  %v293_v21 = vpack.c.bf16 %v251_v17, %v249_v16 }
  0x4f   :  { %1041 = vmatpush.bf16.msra.mxu2 %v1664_v19 }
  0x52   :  { %866 = vperm.xlu1 %1674, %v708_v25   ;;  %861 = vperm.xlu0 %1673, %v707_v26   ;;  %v287_v25 = vpack.c.bf16 %v239_v23, %v237_v22  ;;  %v136_v26 = vld [vmem:[%s2145_s0 + $0x40] sm:$0xff] }
  0x53   :  { %423 = vmatmul.bf16.gmra.mxu0 %v278_v27  ;;  %512 = vmatmul.bf16.gmra.mxu1 %v279_v28  ;;  %v137_v27 = vld [vmem:[%s2145_s0 + $0x48] sm:$0xff]  ;;  %v176_v29 = vunpack.c.0.s8 %v136_v26  ;;  %v178_v30 = vunpack.c.1.s8 %v136_v26  ;;  %v180_v43 = vunpack.c.2.s8 %v136_v26  ;;  %v182_v44 = vunpack.c.3.s8 %v136_v26 }
  0x54   :  { %v1641_v28 = vld [vmem:[%s2144_s1 + $0x8] sm:$0xff]  ;;  %v177_v31 = vunpack.c.0.s8 %v137_v27  ;;  %v179_v32 = vunpack.c.1.s8 %v137_v27  ;;  %v181_v46 = vunpack.c.2.s8 %v137_v27  ;;  %v183_v47 = vunpack.c.3.s8 %v137_v27 }
  0x55   :  { %v240_v33 = vcvt.s32.f32 %v176_v29  ;;  %v242_v34 = vcvt.s32.f32 %v178_v30  ;;  %v244_v52 = vcvt.s32.f32 %v180_v43  ;;  %v190_v26 = vunpack.c.3.s8 %v138_v0 }
  0x56   :  { %v241_v35 = vcvt.s32.f32 %v177_v31  ;;  %v243_v36 = vcvt.s32.f32 %v179_v32  ;;  %v245_v56 = vcvt.s32.f32 %v181_v46  ;;  %v247_v57 = vcvt.s32.f32 %v183_v47  ;;  %v1645_v46 = vld [vmem:[%s2144_s1 + $0x28] sm:$0xff] }
  0x57   :  { %1280 = vmatmul.bf16.gmra.mxu3 %v1641_v28  ;;  %v288_v38 = vpack.c.bf16 %v242_v34, %v240_v33  ;;  %v189_v28 = vunpack.c.2.s8 %v139_v2  ;;  %v191_v29 = vunpack.c.3.s8 %v139_v2  ;;  %v141_v47 = vld [vmem:[%s2145_s0 + $0x68] sm:$0xff] }
  0x58   :  { %v291_v61 = vpack.c.bf16 %v247_v57, %v245_v56 }
  0x5f   :  { %v732_v19 = vpop.permute.xlu2 %731 }
  0x63   :  { %428 = vmatmul.bf16.gmra.mxu0 %v280_v39  ;;  %517 = vmatmul.bf16.gmra.mxu1 %v281_v40  ;;  %v289_v39 = vpack.c.bf16 %v243_v36, %v241_v35  ;;  %v254_v35 = vcvt.s32.f32 %v190_v26 }
  0x67   :  { %1285 = vmatmul.bf16.gmra.mxu3 %v1642_v42  ;;  %v737_v33 = vpop.permute.xlu2 %736 }
  0x73   :  { %433 = vmatmul.bf16.gmra.mxu0 %v282_v53  ;;  %522 = vmatmul.bf16.gmra.mxu1 %v283_v54  ;;  %v246_v53 = vcvt.s32.f32 %v182_v44 }
  0x74   :  { %v712_v37 = vpop.permute.xlu0 %711  ;;  %v722_v59 = vpop.permute.xlu1 %721 }
  0x75   :  { %v290_v60 = vpack.c.bf16 %v246_v53, %v244_v52  ;;  %v195_v52 = vunpack.c.1.s8 %v141_v47 }
  0x77   :  { %1290 = vmatmul.bf16.gmra.mxu3 %v1643_v1 }
  0x7c   :  { %v717_v51 = vpop.permute.xlu0 %716  ;;  %v727_v11 = vpop.permute.xlu1 %726 }
  0x83   :  { %438 = vmatmul.bf16.gmra.mxu0 %v284_v9  ;;  %527 = vmatmul.bf16.gmra.mxu1 %v285_v10 }
  0x84   :  { %v747_v56 = vpop.permute.xlu1 %746  ;;  %v742_v57 = vpop.permute.xlu0 %741 }
  0x93   :  { %443 = vmatmul.bf16.gmra.mxu0 %v286_v24  ;;  %532 = vmatmul.bf16.gmra.mxu1 %v287_v25  ;;  %v1644_v24 = vld [vmem:[%s2144_s1 + $0x20] sm:$0xff]  ;;  %v188_v25 = vunpack.c.2.s8 %v138_v0 }
  0x94   :  { %1295 = vmatmul.bf16.gmra.mxu3 %v1644_v24 }
  0x95   :  { %v252_v34 = vcvt.s32.f32 %v188_v25 }
  0xa0   :  { %v409_v40 = vpop.f32.mrf.mxu0  ;;  %v498_v41 = vpop.f32.mrf.mxu1 }
  0xa1   :  { %v499_v45 = vadd.f32 %v498_v41, %v409_v40  ;;  %v294_v41 = vpack.c.bf16 %v254_v35, %v252_v34 }
  0xa3   :  { %448 = vmatmul.bf16.gmra.mxu0 %v288_v38  ;;  %537 = vmatmul.bf16.gmra.mxu1 %v289_v39  ;;  %v869_v54 = vmul.f32 %v712_v37, %v499_v45  ;;  %v253_v38 = vcvt.s32.f32 %v189_v28  ;;  %v255_v39 = vcvt.s32.f32 %v191_v29  ;;  %v140_v45 = vld [vmem:[%s2145_s0 + $0x60] sm:$0xff]  ;;  %v1647_v28 = vld [vmem:[%s2144_s1 + $0x38] sm:$0xff] }
  0xa4   :  { %1300 = vmatmul.bf16.gmra.mxu3 %v1645_v46  ;;  %v196_v6 = vunpack.c.2.s8 %v140_v45  ;;  %v198_v7 = vunpack.c.3.s8 %v140_v45  ;;  %v143_v29 = vld [vmem:[%s2145_s0 + $0x78] sm:$0xff] }
  0xa5   :  { %v295_v42 = vpack.c.bf16 %v255_v39, %v253_v38  ;;  %v203_v34 = vunpack.c.1.s8 %v143_v29  ;;  %v762_v38 = vpop.permute.xlu1 %761 }
  0xa6   :  { %v260_v16 = vcvt.s32.f32 %v196_v6  ;;  %v262_v17 = vcvt.s32.f32 %v198_v7 }
  0xa8   :  { %v411_v48 = vpop.f32.mrf.mxu0  ;;  %v500_v49 = vpop.f32.mrf.mxu1 }
  0xa9   :  { %v501_v50 = vadd.f32 %v500_v49, %v411_v48  ;;  %v192_v48 = vunpack.c.0.s8 %v140_v45  ;;  %v194_v49 = vunpack.c.1.s8 %v140_v45  ;;  %v267_v45 = vcvt.s32.f32 %v203_v34 }
  0xab   :  { %v870_v55 = vmul.f32 %v717_v51, %v501_v50  ;;  %v193_v51 = vunpack.c.0.s8 %v141_v47 }
  0xad   :  { %v901_v58 = vpack.c.bf16 %v870_v55, %v869_v54 }
  0xaf   :  { %1042 = vmatmul.bf16.vlgmr.msra.gmra.mxu2 %v901_v58  ;;  %v256_v58 = vcvt.s32.f32 %v192_v48 }
  0xb0   :  { %v414_v62 = vpop.f32.mrf.mxu0  ;;  %v503_v63 = vpop.f32.mrf.mxu1 }
  0xb1   :  { %v504_v5 = vadd.f32 %v503_v63, %v414_v62  ;;  %v257_v62 = vcvt.s32.f32 %v193_v51  ;;  %v259_v63 = vcvt.s32.f32 %v195_v52  ;;  %v1648_v51 = vld [vmem:[%s2144_s1 + $0x40] sm:$0xff] }
  0xb3   :  { %453 = vmatmul.bf16.gmra.mxu0 %v290_v60  ;;  %542 = vmatmul.bf16.gmra.mxu1 %v291_v61  ;;  %v871_v14 = vmul.f32 %v722_v59, %v504_v5  ;;  %v258_v59 = vcvt.s32.f32 %v194_v49  ;;  %v297_v2 = vpack.c.bf16 %v259_v63, %v257_v62  ;;  %v1646_v5 = vld [vmem:[%s2144_s1 + $0x30] sm:$0xff] }
  0xb4   :  { %1305 = vmatmul.bf16.gmra.mxu3 %v1646_v5 }
  0xb5   :  { %v296_v1 = vpack.c.bf16 %v258_v59, %v256_v58  ;;  %v777_v59 = vpop.permute.xlu1 %776 }
  0xb8   :  { %v416_v8 = vpop.f32.mrf.mxu0  ;;  %v505_v9 = vpop.f32.mrf.mxu1 }
  0xb9   :  { %v506_v10 = vadd.f32 %v505_v9, %v416_v8  ;;  %v197_v9 = vunpack.c.2.s8 %v141_v47 }
  0xbb   :  { %v872_v15 = vmul.f32 %v727_v11, %v506_v10  ;;  %v199_v10 = vunpack.c.3.s8 %v141_v47 }
  0xbd   :  { %v902_v18 = vpack.c.bf16 %v872_v15, %v871_v14  ;;  %v752_v14 = vpop.permute.xlu2 %751  ;;  %v757_v15 = vpop.permute.xlu0 %756 }
  0xbf   :  { %1047 = vmatmul.bf16.gmra.mxu2 %v902_v18 }
  0xc0   :  { %v419_v22 = vpop.f32.mrf.mxu0  ;;  %v508_v23 = vpop.f32.mrf.mxu1 }
  0xc1   :  { %v509_v27 = vadd.f32 %v508_v23, %v419_v22  ;;  %v298_v23 = vpack.c.bf16 %v262_v17, %v260_v16 }
  0xc3   :  { %458 = vmatmul.bf16.gmra.mxu0 %v292_v20  ;;  %547 = vmatmul.bf16.gmra.mxu1 %v293_v21  ;;  %v873_v36 = vmul.f32 %v732_v19, %v509_v27  ;;  %v261_v20 = vcvt.s32.f32 %v197_v9  ;;  %v263_v21 = vcvt.s32.f32 %v199_v10  ;;  %v142_v27 = vld [vmem:[%s2145_s0 + $0x70] sm:$0xff] }
  0xc4   :  { %1310 = vmatmul.bf16.gmra.mxu3 %v1647_v28  ;;  %v204_v52 = vunpack.c.2.s8 %v142_v27 }
  0xc5   :  { %v299_v24 = vpack.c.bf16 %v263_v21, %v261_v20  ;;  %v767_v39 = vpop.permute.xlu2 %766 }
  0xc6   :  { %v268_v62 = vcvt.s32.f32 %v204_v52 }
  0xc8   :  { %v421_v30 = vpop.f32.mrf.mxu0  ;;  %v510_v31 = vpop.f32.mrf.mxu1 }
  0xc9   :  { %v511_v32 = vadd.f32 %v510_v31, %v421_v30  ;;  %v200_v30 = vunpack.c.0.s8 %v142_v27  ;;  %v202_v31 = vunpack.c.1.s8 %v142_v27 }
  0xcb   :  { %v874_v37 = vmul.f32 %v737_v33, %v511_v32  ;;  %v201_v33 = vunpack.c.0.s8 %v143_v29 }
  0xcd   :  { %v903_v40 = vpack.c.bf16 %v874_v37, %v873_v36 }
  0xcf   :  { %1052 = vmatmul.bf16.gmra.mxu2 %v903_v40  ;;  %v264_v40 = vcvt.s32.f32 %v200_v30 }
  0xd0   :  { %v424_v43 = vpop.f32.mrf.mxu0  ;;  %v513_v44 = vpop.f32.mrf.mxu1 }
  0xd1   :  { %v514_v50 = vadd.f32 %v513_v44, %v424_v43  ;;  %v265_v44 = vcvt.s32.f32 %v201_v33 }
  0xd3   :  { %463 = vmatmul.bf16.gmra.mxu0 %v294_v41  ;;  %552 = vmatmul.bf16.gmra.mxu1 %v295_v42  ;;  %v875_v60 = vmul.f32 %v742_v57, %v514_v50  ;;  %v266_v41 = vcvt.s32.f32 %v202_v31  ;;  %v301_v48 = vpack.c.bf16 %v267_v45, %v265_v44  ;;  %v792_v31 = vpop.permute.xlu1 %791 }
  0xd4   :  { %1315 = vmatmul.bf16.gmra.mxu3 %v1648_v51 }
  0xd5   :  { %v300_v47 = vpack.c.bf16 %v266_v41, %v264_v40 }
  0xd8   :  { %v426_v53 = vpop.f32.mrf.mxu0  ;;  %v515_v54 = vpop.f32.mrf.mxu1 }
  0xd9   :  { %v516_v55 = vadd.f32 %v515_v54, %v426_v53  ;;  %v206_v53 = vunpack.c.3.s8 %v142_v27 }
  0xdb   :  { %v876_v61 = vmul.f32 %v747_v56, %v516_v55  ;;  %v205_v55 = vunpack.c.2.s8 %v143_v29  ;;  %v207_v56 = vunpack.c.3.s8 %v143_v29  ;;  %v270_v63 = vcvt.s32.f32 %v206_v53 }
  0xdd   :  { %v904_v0 = vpack.c.bf16 %v876_v61, %v875_v60  ;;  %v772_v61 = vpop.permute.xlu0 %771  ;;  %v302_v6 = vpack.c.bf16 %v270_v63, %v268_v62  ;;  %v1652_v63 = vld [vmem:[%s2144_s1 + $0x60] sm:$0xff] }
  0xdf   :  { %1057 = vmatmul.bf16.gmra.mxu2 %v904_v0  ;;  %v1276_v0 = vpop.f32.mrf.mxu3 }
  0xe0   :  { %v429_v3 = vpop.f32.mrf.mxu0  ;;  %v518_v4 = vpop.f32.mrf.mxu1 }
  0xe1   :  { %v519_v8 = vadd.f32 %v518_v4, %v429_v3  ;;  %v269_v3 = vcvt.s32.f32 %v205_v55  ;;  %v271_v4 = vcvt.s32.f32 %v207_v56 }
  0xe3   :  { %468 = vmatmul.bf16.gmra.mxu0 %v296_v1  ;;  %557 = vmatmul.bf16.gmra.mxu1 %v297_v2  ;;  %v877_v18 = vmul.f32 %v752_v14, %v519_v8  ;;  %v303_v7 = vpack.c.bf16 %v271_v4, %v269_v3 }
  0xe5   :  { %v787_v17 = vpop.permute.xlu0 %786 }
  0xe7   :  { %v1278_v10 = vpop.f32.mrf.mxu3 }
  0xe8   :  { %v431_v11 = vpop.f32.mrf.mxu0  ;;  %v520_v12 = vpop.f32.mrf.mxu1 }
  0xe9   :  { %v521_v13 = vadd.f32 %v520_v12, %v431_v11  ;;  %v1649_v11 = vld [vmem:[%s2144_s1 + $0x48] sm:$0xff] }
  0xea   :  { %1320 = vmatmul.bf16.gmra.mxu3 %v1649_v11 }
  0xeb   :  { %v878_v19 = vmul.f32 %v757_v15, %v521_v13  ;;  %v782_v15 = vpop.permute.xlu2 %781 }
  0xed   :  { %v905_v22 = vpack.c.bf16 %v878_v19, %v877_v18 }
  0xef   :  { %1062 = vmatmul.bf16.gmra.mxu2 %v905_v22  ;;  %v1281_v18 = vpop.f32.mrf.mxu3 }
  0xf0   :  { %v434_v25 = vpop.f32.mrf.mxu0  ;;  %v523_v26 = vpop.f32.mrf.mxu1 }
  0xf1   :  { %v524_v32 = vadd.f32 %v523_v26, %v434_v25  ;;  %v1650_v25 = vld [vmem:[%s2144_s1 + $0x50] sm:$0xff] }
  0xf3   :  { %473 = vmatmul.bf16.gmra.mxu0 %v298_v23  ;;  %562 = vmatmul.bf16.gmra.mxu1 %v299_v24  ;;  %v879_v42 = vmul.f32 %v762_v38, %v524_v32  ;;  %v797_v29 = vpop.permute.xlu2 %796  ;;  %v1989_v38 = vld [vmem:[%s2148_s5] ss:$0 sm:$0xff] }
  0xf7   :  { %v1283_v24 = vpop.f32.mrf.mxu3 }
  0xf8   :  { %v436_v35 = vpop.f32.mrf.mxu0  ;;  %v525_v36 = vpop.f32.mrf.mxu1 }
  0xf9   :  { %v526_v37 = vadd.f32 %v525_v36, %v436_v35 }
  0xfa   :  { %1325 = vmatmul.bf16.gmra.mxu3 %v1650_v25 }
  0xfb   :  { %v880_v43 = vmul.f32 %v767_v39, %v526_v37  ;;  %v812_v3 = vpop.permute.xlu2 %811 }
  0xfd   :  { %v906_v46 = vpack.c.bf16 %v880_v43, %v879_v42  ;;  %v1651_v43 = vld [vmem:[%s2144_s1 + $0x58] sm:$0xff] }
  0xff   :  { %1067 = vmatmul.bf16.gmra.mxu2 %v906_v46  ;;  %v1286_v32 = vpop.f32.mrf.mxu3 }
 0x100   :  { %v439_v49 = vpop.f32.mrf.mxu0  ;;  %v528_v50 = vpop.f32.mrf.mxu1 }
 0x101   :  { %v529_v54 = vadd.f32 %v528_v50, %v439_v49 }
 0x103   :  { %478 = vmatmul.bf16.gmra.mxu0 %v300_v47  ;;  %567 = vmatmul.bf16.gmra.mxu1 %v301_v48  ;;  %v881_v1 = vmul.f32 %v772_v61, %v529_v54  ;;  %v807_v47 = vpop.permute.xlu1 %806  ;;  %v802_v48 = vpop.permute.xlu0 %801 }
 0x107   :  { %v1991_v40 = vpop.f32.mrf.mxu3 }
 0x108   :  { %v441_v57 = vpop.f32.mrf.mxu0  ;;  %v530_v58 = vpop.f32.mrf.mxu1 }
 0x109   :  { %v531_v60 = vadd.f32 %v530_v58, %v441_v57 }
 0x10a   :  { %1330 = vmatmul.bf16.gmra.mxu3 %v1651_v43 }
 0x10b   :  { %v882_v2 = vmul.f32 %v777_v59, %v531_v60  ;;  %v817_v4 = vpop.permute.xlu0 %816 }
 0x10d   :  { %v907_v5 = vpack.c.bf16 %v882_v2, %v881_v1 }
 0x10f   :  { %1072 = vmatmul.bf16.gmra.mxu2 %v907_v5  ;;  %v1291_v51 = vpop.f32.mrf.mxu3 }
 0x110   :  { %v444_v8 = vpop.f32.mrf.mxu0  ;;  %v533_v9 = vpop.f32.mrf.mxu1 }
 0x111   :  { %v534_v12 = vadd.f32 %v533_v9, %v444_v8 }
 0x113   :  { %483 = vmatmul.bf16.gmra.mxu0 %v302_v6  ;;  %572 = vmatmul.bf16.gmra.mxu1 %v303_v7  ;;  %v883_v19 = vmul.f32 %v782_v15, %v534_v12 }
 0x117   :  { %v2004_v60 = vpop.f32.mrf.mxu3 }
 0x118   :  { %v446_v13 = vpop.f32.mrf.mxu0  ;;  %v535_v14 = vpop.f32.mrf.mxu1 }
 0x119   :  { %v536_v16 = vadd.f32 %v535_v14, %v446_v13 }
 0x11a   :  { %1335 = vmatmul.bf16.gmra.mxu3 %v1652_v63 }
 0x11b   :  { %v884_v20 = vmul.f32 %v787_v17, %v536_v16 }
 0x11d   :  { %v908_v21 = vpack.c.bf16 %v884_v20, %v883_v19  ;;  %v1653_v19 = vld [vmem:[%s2144_s1 + $0x68] sm:$0xff] }
 0x11f   :  { %1077 = vmatmul.bf16.gmra.mxu2 %v908_v21  ;;  %v1296_v7 = vpop.f32.mrf.mxu3 }
 0x120   :  { %v449_v22 = vpop.f32.mrf.mxu0  ;;  %v538_v23 = vpop.f32.mrf.mxu1 }
 0x121   :  { %v539_v26 = vadd.f32 %v538_v23, %v449_v22  ;;  %v822_v23 = vpop.permute.xlu1 %821 }
 0x123   :  { %v885_v33 = vmul.f32 %v792_v31, %v539_v26 }
 0x127   :  { %v2017_v16 = vpop.f32.mrf.mxu3 }
 0x128   :  { %v451_v27 = vpop.f32.mrf.mxu0  ;;  %v540_v28 = vpop.f32.mrf.mxu1 }
 0x129   :  { %v541_v30 = vadd.f32 %v540_v28, %v451_v27 }
 0x12a   :  { %1340 = vmatmul.bf16.gmra.mxu3 %v1653_v19 }
 0x12b   :  { %v886_v34 = vmul.f32 %v797_v29, %v541_v30 }
 0x12d   :  { %v909_v35 = vpack.c.bf16 %v886_v34, %v885_v33 }
 0x12f   :  { %1082 = vmatmul.bf16.gmra.mxu2 %v909_v35  ;;  %v1301_v27 = vpop.f32.mrf.mxu3 }
 0x130   :  { %v454_v36 = vpop.f32.mrf.mxu0  ;;  %v543_v37 = vpop.f32.mrf.mxu1 }
 0x131   :  { %v544_v44 = vadd.f32 %v543_v37, %v454_v36 }
 0x132   :  { %v1043_v39 = vpop.f32.mrf.mxu2 }
 0x133   :  { %v1277_v41 = vadd.f32 %v1276_v0, %v1043_v39  ;;  %v887_v52 = vmul.f32 %v802_v48, %v544_v44  ;;  %v837_v44 = vpop.permute.xlu1 %836 }
 0x135   :  { %v1360_v42 = vadd.f32 %v1989_v38, %v1277_v41  ;;  %v1654_v41 = vld [vmem:[%s2144_s1 + $0x70] sm:$0xff] }
 0x137   :  { %1392 = vst [vmem:[%s2149_s6] sm:$0xff] %v1360_v42  ;;  %v1303_v36 = vpop.f32.mrf.mxu3 }
 0x138   :  { %v456_v45 = vpop.f32.mrf.mxu0  ;;  %v545_v46 = vpop.f32.mrf.mxu1 }
 0x139   :  { %v546_v49 = vadd.f32 %v545_v46, %v456_v45  ;;  %v832_v46 = vpop.permute.xlu0 %831 }
 0x13a   :  { %v1045_v50 = vpop.f32.mrf.mxu2  ;;  %1345 = vmatmul.bf16.gmra.mxu3 %v1654_v41 }
 0x13b   :  { %v888_v53 = vmul.f32 %v807_v47, %v546_v49  ;;  %v1279_v54 = vadd.f32 %v1278_v10, %v1045_v50 }
 0x13d   :  { %v1361_v55 = vadd.f32 %v1989_v38, %v1279_v54  ;;  %v910_v56 = vpack.c.bf16 %v888_v53, %v887_v52 }
 0x13f   :  { %1393 = vst [vmem:[%s2149_s6 + $0x8] sm:$0xff] %v1361_v55  ;;  %1087 = vmatmul.bf16.gmra.mxu2 %v910_v56 }
 0x140   :  { %v459_v57 = vpop.f32.mrf.mxu0  ;;  %v548_v58 = vpop.f32.mrf.mxu1 }
 0x141   :  { %v549_v0 = vadd.f32 %v548_v58, %v459_v57 }
 0x142   :  { %v1048_v59 = vpop.f32.mrf.mxu2 }
 0x143   :  { %v1282_v61 = vadd.f32 %v1281_v18, %v1048_v59  ;;  %v889_v8 = vmul.f32 %v812_v3, %v549_v0 }
 0x145   :  { %v1362_v62 = vadd.f32 %v1989_v38, %v1282_v61 }
 0x147   :  { %1394 = vst [vmem:[%s2149_s6 + $0x10] sm:$0xff] %v1362_v62 }
 0x148   :  { %v461_v1 = vpop.f32.mrf.mxu0  ;;  %v550_v2 = vpop.f32.mrf.mxu1 }
 0x149   :  { %v551_v5 = vadd.f32 %v550_v2, %v461_v1  ;;  %v847_v2 = vpop.permute.xlu0 %846 }
 0x14a   :  { %v1050_v6 = vpop.f32.mrf.mxu2 }
 0x14b   :  { %v890_v9 = vmul.f32 %v817_v4, %v551_v5  ;;  %v1284_v10 = vadd.f32 %v1283_v24, %v1050_v6  ;;  %v827_v24 = vpop.permute.xlu2 %826 }
 0x14d   :  { %v1363_v11 = vadd.f32 %v1989_v38, %v1284_v10  ;;  %v911_v12 = vpack.c.bf16 %v890_v9, %v889_v8 }
 0x14f   :  { %1395 = vst [vmem:[%s2149_s6 + $0x18] sm:$0xff] %v1363_v11  ;;  %1092 = vmatmul.bf16.gmra.mxu2 %v911_v12 }
 0x150   :  { %v464_v13 = vpop.f32.mrf.mxu0  ;;  %v553_v14 = vpop.f32.mrf.mxu1 }
 0x151   :  { %v554_v20 = vadd.f32 %v553_v14, %v464_v13  ;;  %v862_v41 = vpop.permute.xlu0 %861 }
 0x152   :  { %v1053_v15 = vpop.f32.mrf.mxu2 }
 0x153   :  { %v1287_v17 = vadd.f32 %v1286_v32, %v1053_v15  ;;  %v891_v28 = vmul.f32 %v822_v23, %v554_v20  ;;  %v842_v0 = vpop.permute.xlu2 %841 }
 0x155   :  { %v1364_v18 = vadd.f32 %v1989_v38, %v1287_v17 }
 0x157   :  { %1396 = vst [vmem:[%s2149_s6 + $0x20] sm:$0xff] %v1364_v18  ;;  %v852_v18 = vpop.permute.xlu1 %851 }
 0x158   :  { %v466_v21 = vpop.f32.mrf.mxu0  ;;  %v555_v22 = vpop.f32.mrf.mxu1 }
 0x159   :  { %v556_v25 = vadd.f32 %v555_v22, %v466_v21 }
 0x15a   :  { %v1055_v26 = vpop.f32.mrf.mxu2 }
 0x15b   :  { %v892_v29 = vmul.f32 %v827_v24, %v556_v25  ;;  %v1289_v30 = vadd.f32 %v1991_v40, %v1055_v26  ;;  %v857_v19 = vpop.permute.xlu2 %856 }
 0x15d   :  { %v1365_v31 = vadd.f32 %v1989_v38, %v1289_v30  ;;  %v912_v32 = vpack.c.bf16 %v892_v29, %v891_v28 }
 0x15f   :  { %1397 = vst [vmem:[%s2149_s6 + $0x28] sm:$0xff] %v1365_v31  ;;  %1097 = vmatmul.bf16.gmra.mxu2 %v912_v32 }
 0x160   :  { %v469_v33 = vpop.f32.mrf.mxu0  ;;  %v558_v34 = vpop.f32.mrf.mxu1 }
 0x161   :  { %v559_v40 = vadd.f32 %v558_v34, %v469_v33 }
 0x162   :  { %v1058_v35 = vpop.f32.mrf.mxu2 }
 0x163   :  { %v1292_v37 = vadd.f32 %v1291_v51, %v1058_v35  ;;  %v893_v48 = vmul.f32 %v832_v46, %v559_v40  ;;  %v1306_v51 = vpop.f32.mrf.mxu3 }
 0x165   :  { %v1366_v39 = vadd.f32 %v1989_v38, %v1292_v37  ;;  %v867_v37 = vpop.permute.xlu1 %866 }
 0x167   :  { %1398 = vst [vmem:[%s2149_s6 + $0x30] sm:$0xff] %v1366_v39 }
 0x168   :  { %v471_v42 = vpop.f32.mrf.mxu0  ;;  %v560_v43 = vpop.f32.mrf.mxu1 }
 0x169   :  { %v561_v45 = vadd.f32 %v560_v43, %v471_v42 }
 0x16a   :  { %v1060_v47 = vpop.f32.mrf.mxu2 }
 0x16b   :  { %v894_v49 = vmul.f32 %v837_v44, %v561_v45  ;;  %v1294_v50 = vadd.f32 %v2004_v60, %v1060_v47  ;;  %v1308_v59 = vpop.f32.mrf.mxu3  ;;  %v1655_v60 = vld [vmem:[%s2144_s1 + $0x78] sm:$0xff] }
 0x16c   :  { %1350 = vmatmul.bf16.gmra.mxu3 %v1655_v60 }
 0x16d   :  { %v1367_v52 = vadd.f32 %v1989_v38, %v1294_v50  ;;  %v913_v53 = vpack.c.bf16 %v894_v49, %v893_v48 }
 0x16f   :  { %1399 = vst [vmem:[%s2149_s6 + $0x38] sm:$0xff] %v1367_v52  ;;  %1102 = vmatmul.bf16.gmra.mxu2 %v913_v53 }
 0x170   :  { %v474_v54 = vpop.f32.mrf.mxu0  ;;  %v563_v55 = vpop.f32.mrf.mxu1 }
 0x171   :  { %v564_v61 = vadd.f32 %v563_v55, %v474_v54 }
 0x172   :  { %v1063_v56 = vpop.f32.mrf.mxu2 }
 0x173   :  { %v1297_v57 = vadd.f32 %v1296_v7, %v1063_v56  ;;  %v895_v4 = vmul.f32 %v842_v0, %v564_v61  ;;  %v1311_v9 = vpop.f32.mrf.mxu3 }
 0x175   :  { %v1368_v58 = vadd.f32 %v1989_v38, %v1297_v57 }
 0x177   :  { %1400 = vst [vmem:[%s2149_s6 + $0x40] sm:$0xff] %v1368_v58 }
 0x178   :  { %v476_v62 = vpop.f32.mrf.mxu0  ;;  %v565_v63 = vpop.f32.mrf.mxu1 }
 0x179   :  { %v566_v1 = vadd.f32 %v565_v63, %v476_v62 }
 0x17a   :  { %v1065_v3 = vpop.f32.mrf.mxu2 }
 0x17b   :  { %v896_v5 = vmul.f32 %v847_v2, %v566_v1  ;;  %v1299_v6 = vadd.f32 %v2017_v16, %v1065_v3  ;;  %v1313_v22 = vpop.f32.mrf.mxu3 }
 0x17d   :  { %v1369_v7 = vadd.f32 %v1989_v38, %v1299_v6  ;;  %v914_v8 = vpack.c.bf16 %v896_v5, %v895_v4 }
 0x17f   :  { %1401 = vst [vmem:[%s2149_s6 + $0x48] sm:$0xff] %v1369_v7  ;;  %1107 = vmatmul.bf16.gmra.mxu2 %v914_v8 }
 0x180   :  { %v479_v10 = vpop.f32.mrf.mxu0  ;;  %v568_v11 = vpop.f32.mrf.mxu1 }
 0x181   :  { %v569_v15 = vadd.f32 %v568_v11, %v479_v10 }
 0x182   :  { %v1068_v12 = vpop.f32.mrf.mxu2 }
 0x183   :  { %v1302_v13 = vadd.f32 %v1301_v27, %v1068_v12  ;;  %v897_v23 = vmul.f32 %v852_v18, %v569_v15  ;;  %v1316_v32 = vpop.f32.mrf.mxu3 }
 0x185   :  { %v1370_v14 = vadd.f32 %v1989_v38, %v1302_v13 }
 0x187   :  { %1402 = vst [vmem:[%s2149_s6 + $0x50] sm:$0xff] %v1370_v14 }
 0x188   :  { %v481_v16 = vpop.f32.mrf.mxu0  ;;  %v570_v17 = vpop.f32.mrf.mxu1 }
 0x189   :  { %v571_v20 = vadd.f32 %v570_v17, %v481_v16 }
 0x18a   :  { %v1070_v21 = vpop.f32.mrf.mxu2 }
 0x18b   :  { %v898_v24 = vmul.f32 %v857_v19, %v571_v20  ;;  %v1304_v25 = vadd.f32 %v1303_v36, %v1070_v21  ;;  %v1318_v47 = vpop.f32.mrf.mxu3 }
 0x18d   :  { %v1371_v26 = vadd.f32 %v1989_v38, %v1304_v25  ;;  %v915_v27 = vpack.c.bf16 %v898_v24, %v897_v23 }
 0x18f   :  { %1403 = vst [vmem:[%s2149_s6 + $0x58] sm:$0xff] %v1371_v26  ;;  %1112 = vmatmul.bf16.gmra.mxu2 %v915_v27 }
 0x190   :  { %v484_v28 = vpop.f32.mrf.mxu0  ;;  %v573_v29 = vpop.f32.mrf.mxu1 }
 0x191   :  { %v574_v34 = vadd.f32 %v573_v29, %v484_v28 }
 0x192   :  { %v1073_v30 = vpop.f32.mrf.mxu2 }
 0x193   :  { %v1307_v31 = vadd.f32 %v1306_v51, %v1073_v30  ;;  %v899_v42 = vmul.f32 %v862_v41, %v574_v34  ;;  %v1321_v51 = vpop.f32.mrf.mxu3 }
 0x195   :  { %v1372_v33 = vadd.f32 %v1989_v38, %v1307_v31 }
 0x197   :  { %1404 = vst [vmem:[%s2149_s6 + $0x60] sm:$0xff] %v1372_v33 }
 0x198   :  { %v486_v35 = vpop.f32.mrf.mxu0  ;;  %v575_v36 = vpop.f32.mrf.mxu1 }
 0x199   :  { %v576_v39 = vadd.f32 %v575_v36, %v486_v35 }
 0x19a   :  { %v1075_v40 = vpop.f32.mrf.mxu2 }
 0x19b   :  { %v900_v43 = vmul.f32 %v867_v37, %v576_v39  ;;  %v1309_v44 = vadd.f32 %v1308_v59, %v1075_v40  ;;  %v1323_v56 = vpop.f32.mrf.mxu3 }
 0x19d   :  { %v1373_v45 = vadd.f32 %v1989_v38, %v1309_v44  ;;  %v916_v46 = vpack.c.bf16 %v900_v43, %v899_v42 }
 0x19f   :  { %1405 = vst [vmem:[%s2149_s6 + $0x68] sm:$0xff] %v1373_v45  ;;  %1117 = vmatmul.bf16.gmra.mxu2 %v916_v46 }
 0x1a2   :  { %v1078_v48 = vpop.f32.mrf.mxu2 }
 0x1a3   :  { %v1312_v49 = vadd.f32 %v1311_v9, %v1078_v48  ;;  %v1326_v61 = vpop.f32.mrf.mxu3 }
 0x1a5   :  { %v1374_v50 = vadd.f32 %v1989_v38, %v1312_v49 }
 0x1a7   :  { %1406 = vst [vmem:[%s2149_s6 + $0x70] sm:$0xff] %v1374_v50 }
 0x1aa   :  { %v1080_v52 = vpop.f32.mrf.mxu2 }
 0x1ab   :  { %v1314_v53 = vadd.f32 %v1313_v22, %v1080_v52  ;;  %v1328_v2 = vpop.f32.mrf.mxu3 }
 0x1ad   :  { %v1375_v54 = vadd.f32 %v1989_v38, %v1314_v53 }
 0x1af   :  { %1407 = vst [vmem:[%s2149_s6 + $0x78] sm:$0xff] %v1375_v54 }
 0x1b2   :  { %v1083_v55 = vpop.f32.mrf.mxu2 }
 0x1b3   :  { %v1317_v57 = vadd.f32 %v1316_v32, %v1083_v55  ;;  %v1331_v6 = vpop.f32.mrf.mxu3 }
 0x1b5   :  { %v1376_v58 = vadd.f32 %v1989_v38, %v1317_v57 }
 0x1b7   :  { %1408 = vst [vmem:[%s2149_s6 + $0x80] sm:$0xff] %v1376_v58 }
 0x1ba   :  { %v1085_v59 = vpop.f32.mrf.mxu2 }
 0x1bb   :  { %v1319_v60 = vadd.f32 %v1318_v47, %v1085_v59  ;;  %v1333_v11 = vpop.f32.mrf.mxu3 }
 0x1bd   :  { %v1377_v62 = vadd.f32 %v1989_v38, %v1319_v60 }
 0x1bf   :  { %1409 = vst [vmem:[%s2149_s6 + $0x88] sm:$0xff] %v1377_v62 }
 0x1c2   :  { %v1088_v63 = vpop.f32.mrf.mxu2 }
 0x1c3   :  { %v1322_v0 = vadd.f32 %v1321_v51, %v1088_v63  ;;  %v1336_v16 = vpop.f32.mrf.mxu3 }
 0x1c5   :  { %v1378_v1 = vadd.f32 %v1989_v38, %v1322_v0 }
 0x1c7   :  { %1410 = vst [vmem:[%s2149_s6 + $0x90] sm:$0xff] %v1378_v1 }
 0x1ca   :  { %v1090_v3 = vpop.f32.mrf.mxu2 }
 0x1cb   :  { %v1324_v4 = vadd.f32 %v1323_v56, %v1090_v3  ;;  %v1338_v21 = vpop.f32.mrf.mxu3 }
 0x1cd   :  { %v1379_v5 = vadd.f32 %v1989_v38, %v1324_v4 }
 0x1cf   :  { %1411 = vst [vmem:[%s2149_s6 + $0x98] sm:$0xff] %v1379_v5 }
 0x1d2   :  { %v1093_v7 = vpop.f32.mrf.mxu2 }
 0x1d3   :  { %v1327_v8 = vadd.f32 %v1326_v61, %v1093_v7  ;;  %v1341_v25 = vpop.f32.mrf.mxu3 }
 0x1d5   :  { %v1380_v9 = vadd.f32 %v1989_v38, %v1327_v8 }
 0x1d7   :  { %1412 = vst [vmem:[%s2149_s6 + $0xa0] sm:$0xff] %v1380_v9 }
 0x1da   :  { %v1095_v10 = vpop.f32.mrf.mxu2 }
 0x1db   :  { %v1329_v12 = vadd.f32 %v1328_v2, %v1095_v10  ;;  %v1343_v30 = vpop.f32.mrf.mxu3 }
 0x1dd   :  { %v1381_v13 = vadd.f32 %v1989_v38, %v1329_v12 }
 0x1df   :  { %1413 = vst [vmem:[%s2149_s6 + $0xa8] sm:$0xff] %v1381_v13 }
 0x1e2   :  { %v1098_v14 = vpop.f32.mrf.mxu2 }
 0x1e3   :  { %v1332_v15 = vadd.f32 %v1331_v6, %v1098_v14  ;;  %v1346_v35 = vpop.f32.mrf.mxu3 }
 0x1e5   :  { %v1382_v17 = vadd.f32 %v1989_v38, %v1332_v15 }
 0x1e7   :  { %1414 = vst [vmem:[%s2149_s6 + $0xb0] sm:$0xff] %v1382_v17 }
 0x1ea   :  { %v1100_v18 = vpop.f32.mrf.mxu2 }
 0x1eb   :  { %v1334_v19 = vadd.f32 %v1333_v11, %v1100_v18  ;;  %v1348_v40 = vpop.f32.mrf.mxu3 }
 0x1ed   :  { %v1383_v20 = vadd.f32 %v1989_v38, %v1334_v19 }
 0x1ef   :  { %1415 = vst [vmem:[%s2149_s6 + $0xb8] sm:$0xff] %v1383_v20 }
 0x1f2   :  { %v1103_v22 = vpop.f32.mrf.mxu2 }
 0x1f3   :  { %v1337_v23 = vadd.f32 %v1336_v16, %v1103_v22  ;;  %v1351_v45 = vpop.f32.mrf.mxu3 }
 0x1f5   :  { %v1384_v24 = vadd.f32 %v1989_v38, %v1337_v23 }
 0x1f7   :  { %1416 = vst [vmem:[%s2149_s6 + $0xc0] sm:$0xff] %v1384_v24 }
 0x1fa   :  { %v1105_v26 = vpop.f32.mrf.mxu2 }
 0x1fb   :  { %v1339_v27 = vadd.f32 %v1338_v21, %v1105_v26  ;;  %v1353_v49 = vpop.f32.mrf.mxu3 }
 0x1fd   :  { %v1385_v28 = vadd.f32 %v1989_v38, %v1339_v27 }
 0x1ff   :  { %1417 = vst [vmem:[%s2149_s6 + $0xc8] sm:$0xff] %v1385_v28 }
 0x202   :  { %v1108_v29 = vpop.f32.mrf.mxu2 }
 0x203   :  { %v1342_v31 = vadd.f32 %v1341_v25, %v1108_v29 }
 0x205   :  { %v1386_v32 = vadd.f32 %v1989_v38, %v1342_v31 }
 0x207   :  { %1418 = vst [vmem:[%s2149_s6 + $0xd0] sm:$0xff] %v1386_v32 }
 0x20a   :  { %v1110_v33 = vpop.f32.mrf.mxu2 }
 0x20b   :  { %v1344_v34 = vadd.f32 %v1343_v30, %v1110_v33 }
 0x20d   :  { %v1387_v36 = vadd.f32 %v1989_v38, %v1344_v34 }
 0x20f   :  { %1419 = vst [vmem:[%s2149_s6 + $0xd8] sm:$0xff] %v1387_v36 }
 0x212   :  { %v1113_v37 = vpop.f32.mrf.mxu2 }
 0x213   :  { %v1347_v39 = vadd.f32 %v1346_v35, %v1113_v37 }
 0x215   :  { %v1388_v41 = vadd.f32 %v1989_v38, %v1347_v39 }
 0x217   :  { %1420 = vst [vmem:[%s2149_s6 + $0xe0] sm:$0xff] %v1388_v41 }
 0x21a   :  { %v1115_v42 = vpop.f32.mrf.mxu2 }
 0x21b   :  { %v1349_v43 = vadd.f32 %v1348_v40, %v1115_v42 }
 0x21d   :  { %v1389_v44 = vadd.f32 %v1989_v38, %v1349_v43 }
 0x21f   :  { %1421 = vst [vmem:[%s2149_s6 + $0xe8] sm:$0xff] %v1389_v44 }
 0x222   :  { %v1118_v46 = vpop.f32.mrf.mxu2 }
 0x223   :  { %v1352_v47 = vadd.f32 %v1351_v45, %v1118_v46 }
 0x225   :  { %v1390_v48 = vadd.f32 %v1989_v38, %v1352_v47 }
 0x227   :  { %1422 = vst [vmem:[%s2149_s6 + $0xf0] sm:$0xff] %v1390_v48 }
 0x22a   :  { %v1120_v50 = vpop.f32.mrf.mxu2 }
 0x22b   :  { %v1354_v51 = vadd.f32 %v1353_v49, %v1120_v50 }
 0x22d   :  { %v1391_v52 = vadd.f32 %v1989_v38, %v1354_v51 }
 0x22f   :  { %1423 = vst [vmem:[%s2149_s6 + $0xf8] sm:$0xff] %v1391_v52 }

// kernel: graphsage_forward.4
= control target key start
LH: loop header
LB: loop body
LE: loop exit
PB: predicated region body
PF: predicated region fallthrough
CT: control target
= control target key end

     0   :  { %v1836_v0 = vmov 0   ;;  %s2269_s2 = inlined_call_operand.vmem [shape: f32[256,1], index: 2, kind: input, shape index: {}]   ;;  %s2270_s1 = inlined_call_operand.vmem [shape: bf16[256,128], index: 1, kind: input, shape index: {}]   ;;  %s2271_s0 = inlined_call_operand.vmem [shape: s8[256,256], index: 0, kind: input, shape index: {}]   ;;  %s2272_s3 = inlined_call_operand.vmem [shape: bf16[128,128], index: 3, kind: input, shape index: {}]   ;;  %s2273_s4 = inlined_call_operand.vmem [shape: bf16[128,128], index: 4, kind: input, shape index: {}]   ;;  %s2274_s5 = inlined_call_operand.vmem [shape: f32[1,128], index: 5, kind: input, shape index: {}]   ;;  %s2275_s6 = inlined_call_operand.vmem [shape: bf16[256,128], index: 6, kind: output, shape index: {}]  }
   0x1   :  { %1833 = vset.pattern.permute.xlu1 %v1836_v0  ;;  %1832 = vset.pattern.permute.xlu0 %v1836_v0  ;;  %v679_v1 = vld [vmem:[%s2269_s2 + $0x10] sm:$0xff]  ;;  %v677_v2 = vld [vmem:[%s2269_s2] sm:$0xff]  ;;  %v1695_v3 = vld [vmem:[%s2270_s1 + $0x38] sm:$0xff] }
   0x2   :  { %721 = vperm.xlu1 %1833, %v679_v1   ;;  %711 = vperm.xlu0 %1832, %v677_v2   ;;  %v1703_v4 = vld [vmem:[%s2270_s1 + $0x78] sm:$0xff]  ;;  %v1694_v5 = vld [vmem:[%s2270_s1 + $0x30] sm:$0xff]  ;;  %v678_v8 = vld [vmem:[%s2269_s2 + $0x8] sm:$0xff] }
   0x3   :  { %400 = vmatpush.bf16.msra.mxu0 %v1695_v3  ;;  %1834 = vset.pattern.permute.xlu2 %v1836_v0  ;;  %v1702_v6 = vld [vmem:[%s2270_s1 + $0x70] sm:$0xff]  ;;  %v680_v7 = vld [vmem:[%s2269_s2 + $0x18] sm:$0xff]  ;;  %v1693_v9 = vld [vmem:[%s2270_s1 + $0x28] sm:$0xff] }
   0x4   :  { %489 = vmatpush.bf16.msra.mxu1 %v1703_v4  ;;  %v1701_v10 = vld [vmem:[%s2270_s1 + $0x68] sm:$0xff]  ;;  %v681_v11 = vld [vmem:[%s2269_s2 + $0x20] sm:$0xff]  ;;  %v684_v15 = vld [vmem:[%s2269_s2 + $0x38] sm:$0xff] }
   0x5   :  { %731 = vperm.xlu2 %1834, %v681_v11   ;;  %v1692_v12 = vld [vmem:[%s2270_s1 + $0x20] sm:$0xff]  ;;  %v682_v14 = vld [vmem:[%s2269_s2 + $0x28] sm:$0xff]  ;;  %v683_v16 = vld [vmem:[%s2269_s2 + $0x30] sm:$0xff] }
   0x6   :  { %v1700_v13 = vld [vmem:[%s2270_s1 + $0x60] sm:$0xff]  ;;  %v1691_v17 = vld [vmem:[%s2270_s1 + $0x18] sm:$0xff]  ;;  %v1690_v19 = vld [vmem:[%s2270_s1 + $0x10] sm:$0xff] }
   0x7   :  { %401 = vmatpush.bf16.msra.mxu0 %v1694_v5  ;;  %v1699_v18 = vld [vmem:[%s2270_s1 + $0x58] sm:$0xff]  ;;  %v1698_v20 = vld [vmem:[%s2270_s1 + $0x50] sm:$0xff]  ;;  %v128_v21 = vld [vmem:[%s2271_s0] sm:$0xff] }
   0x8   :  { %490 = vmatpush.bf16.msra.mxu1 %v1702_v6  ;;  %v129_v22 = vld [vmem:[%s2271_s0 + $0x8] sm:$0xff]  ;;  %v685_v23 = vld [vmem:[%s2269_s2 + $0x40] sm:$0xff]  ;;  %v687_v24 = vld [vmem:[%s2269_s2 + $0x50] sm:$0xff]  ;;  %v144_v27 = vunpack.c.0.s8 %v128_v21  ;;  %v146_v28 = vunpack.c.1.s8 %v128_v21  ;;  %v148_v46 = vunpack.c.2.s8 %v128_v21  ;;  %v150_v47 = vunpack.c.3.s8 %v128_v21 }
   0x9   :  { %v686_v25 = vld [vmem:[%s2269_s2 + $0x48] sm:$0xff]  ;;  %v145_v29 = vunpack.c.0.s8 %v129_v22  ;;  %v147_v30 = vunpack.c.1.s8 %v129_v22  ;;  %v1688_v32 = vld [vmem:[%s2270_s1] sm:$0xff]  ;;  %v688_v38 = vld [vmem:[%s2269_s2 + $0x58] sm:$0xff]  ;;  %v149_v48 = vunpack.c.2.s8 %v129_v22  ;;  %v151_v49 = vunpack.c.3.s8 %v129_v22 }
   0xa   :  { %726 = vperm.xlu1 %1833, %v680_v7   ;;  %716 = vperm.xlu0 %1832, %v678_v8   ;;  %v1689_v26 = vld [vmem:[%s2270_s1 + $0x8] sm:$0xff]  ;;  %v208_v33 = vcvt.s32.f32 %v144_v27  ;;  %v210_v34 = vcvt.s32.f32 %v146_v28  ;;  %v1696_v37 = vld [vmem:[%s2270_s1 + $0x40] sm:$0xff]  ;;  %v691_v43 = vld [vmem:[%s2269_s2 + $0x70] sm:$0xff]  ;;  %v212_v50 = vcvt.s32.f32 %v148_v46  ;;  %v214_v51 = vcvt.s32.f32 %v150_v47 }
   0xb   :  { %402 = vmatpush.bf16.msra.mxu0 %v1693_v9  ;;  %v1697_v31 = vld [vmem:[%s2270_s1 + $0x48] sm:$0xff]  ;;  %v209_v35 = vcvt.s32.f32 %v145_v29  ;;  %v211_v36 = vcvt.s32.f32 %v147_v30  ;;  %v689_v40 = vld [vmem:[%s2269_s2 + $0x60] sm:$0xff]  ;;  %v692_v45 = vld [vmem:[%s2269_s2 + $0x78] sm:$0xff]  ;;  %v213_v52 = vcvt.s32.f32 %v149_v48  ;;  %v215_v53 = vcvt.s32.f32 %v151_v49 }
   0xc   :  { %491 = vmatpush.bf16.msra.mxu1 %v1701_v10  ;;  %v690_v39 = vld [vmem:[%s2269_s2 + $0x68] sm:$0xff]  ;;  %v272_v41 = vpack.c.bf16 %v210_v34, %v208_v33  ;;  %v693_v44 = vld [vmem:[%s2269_s2 + $0x80] sm:$0xff]  ;;  %v696_v55 = vld [vmem:[%s2269_s2 + $0x98] sm:$0xff]  ;;  %v274_v57 = vpack.c.bf16 %v214_v51, %v212_v50 }
   0xd   :  { %736 = vperm.xlu2 %1834, %v682_v14   ;;  %v273_v42 = vpack.c.bf16 %v211_v36, %v209_v35  ;;  %v694_v54 = vld [vmem:[%s2269_s2 + $0x88] sm:$0xff]  ;;  %v695_v56 = vld [vmem:[%s2269_s2 + $0x90] sm:$0xff]  ;;  %v275_v58 = vpack.c.bf16 %v215_v53, %v213_v52  ;;  %v131_v60 = vld [vmem:[%s2271_s0 + $0x18] sm:$0xff] }
   0xe   :  { %v130_v59 = vld [vmem:[%s2271_s0 + $0x10] sm:$0xff]  ;;  %v697_v61 = vld [vmem:[%s2269_s2 + $0xa0] sm:$0xff]  ;;  %v698_v63 = vld [vmem:[%s2269_s2 + $0xa8] sm:$0xff]  ;;  %v153_v2 = vunpack.c.0.s8 %v131_v60  ;;  %v155_v3 = vunpack.c.1.s8 %v131_v60 }
   0xf   :  { %403 = vmatpush.bf16.msra.mxu0 %v1692_v12  ;;  %v699_v62 = vld [vmem:[%s2269_s2 + $0xb0] sm:$0xff]  ;;  %v152_v0 = vunpack.c.0.s8 %v130_v59  ;;  %v154_v1 = vunpack.c.1.s8 %v130_v59  ;;  %v700_v8 = vld [vmem:[%s2269_s2 + $0xb8] sm:$0xff]  ;;  %v702_v9 = vld [vmem:[%s2269_s2 + $0xc8] sm:$0xff] }
  0x10   :  { %492 = vmatpush.bf16.msra.mxu1 %v1700_v13  ;;  %v217_v6 = vcvt.s32.f32 %v153_v2  ;;  %v219_v7 = vcvt.s32.f32 %v155_v3  ;;  %v701_v10 = vld [vmem:[%s2269_s2 + $0xc0] sm:$0xff]  ;;  %v703_v13 = vld [vmem:[%s2269_s2 + $0xd0] sm:$0xff]  ;;  %v133_v30 = vld [vmem:[%s2271_s0 + $0x28] sm:$0xff] }
  0x11   :  { %v216_v4 = vcvt.s32.f32 %v152_v0  ;;  %v218_v5 = vcvt.s32.f32 %v154_v1  ;;  %v705_v14 = vld [vmem:[%s2269_s2 + $0xe0] sm:$0xff]  ;;  %v161_v33 = vunpack.c.0.s8 %v133_v30  ;;  %v163_v34 = vunpack.c.1.s8 %v133_v30  ;;  %v1735_v51 = vld [vmem:[%s2273_s4 + $0x38] sm:$0xff]  ;;  %v1725_v52 = vld [vmem:[%s2272_s3 + $0x28] sm:$0xff] }
  0x12   :  { %746 = vperm.xlu1 %1833, %v684_v15   ;;  %741 = vperm.xlu0 %1832, %v683_v16   ;;  %v277_v12 = vpack.c.bf16 %v219_v7, %v217_v6  ;;  %v704_v15 = vld [vmem:[%s2269_s2 + $0xd8] sm:$0xff]  ;;  %v156_v16 = vunpack.c.2.s8 %v130_v59  ;;  %v132_v29 = vld [vmem:[%s2271_s0 + $0x20] sm:$0xff]  ;;  %v167_v46 = vunpack.c.3.s8 %v133_v30  ;;  %v1722_v2 = vld [vmem:[%s2272_s3 + $0x10] sm:$0xff] }
  0x13   :  { %404 = vmatpush.bf16.msra.mxu0 %v1691_v17  ;;  %v276_v11 = vpack.c.bf16 %v218_v5, %v216_v4  ;;  %v158_v17 = vunpack.c.3.s8 %v130_v59  ;;  %1034 = vmatpush.bf16.msra.mxu2 %v1735_v51  ;;  %v1733_v59 = vld [vmem:[%s2273_s4 + $0x28] sm:$0xff]  ;;  %v1732_v1 = vld [vmem:[%s2273_s4 + $0x20] sm:$0xff]  ;;  %v1731_v7 = vld [vmem:[%s2273_s4 + $0x18] sm:$0xff] }
  0x14   :  { %493 = vmatpush.bf16.msra.mxu1 %v1699_v18  ;;  %v157_v18 = vunpack.c.2.s8 %v131_v60  ;;  %v231_v50 = vcvt.s32.f32 %v167_v46 }
  0x15   :  { %751 = vperm.xlu2 %1834, %v685_v23   ;;  %v222_v21 = vcvt.s32.f32 %v158_v17 }
  0x16   :  { %v221_v22 = vcvt.s32.f32 %v157_v18 }
  0x17   :  { %405 = vmatpush.bf16.msra.mxu0 %v1690_v19  ;;  %v159_v19 = vunpack.c.3.s8 %v131_v60  ;;  %v1723_v60 = vld [vmem:[%s2272_s3 + $0x18] sm:$0xff] }
  0x18   :  { %494 = vmatpush.bf16.msra.mxu1 %v1698_v20  ;;  %v220_v20 = vcvt.s32.f32 %v156_v16 }
  0x19   :  { %v223_v23 = vcvt.s32.f32 %v159_v19  ;;  %v1728_v19 = vld [vmem:[%s2273_s4] sm:$0xff] }
  0x1a   :  { %761 = vperm.xlu1 %1833, %v687_v24   ;;  %756 = vperm.xlu0 %1832, %v686_v25   ;;  %v706_v24 = vld [vmem:[%s2269_s2 + $0xe8] sm:$0xff]  ;;  %v708_v25 = vld [vmem:[%s2269_s2 + $0xf8] sm:$0xff]  ;;  %v278_v27 = vpack.c.bf16 %v222_v21, %v220_v20 }
  0x1b   :  { %406 = vmatpush.bf16.msra.mxu0 %v1689_v26  ;;  %v707_v26 = vld [vmem:[%s2269_s2 + $0xf0] sm:$0xff]  ;;  %v279_v28 = vpack.c.bf16 %v223_v23, %v221_v22 }
  0x1c   :  { %495 = vmatpush.bf16.msra.mxu1 %v1697_v31  ;;  %v160_v31 = vunpack.c.0.s8 %v132_v29 }
  0x1d   :  { %766 = vperm.xlu2 %1834, %v688_v38   ;;  %v227_v38 = vcvt.s32.f32 %v163_v34 }
  0x1e   :  { %v224_v35 = vcvt.s32.f32 %v160_v31 }
  0x1f   :  { %407 = vmatpush.bf16.msra.mxu0 %v1688_v32  ;;  %v162_v32 = vunpack.c.1.s8 %v132_v29 }
  0x20   :  { %496 = vmatpush.bf16.msra.mxu1 %v1696_v37  ;;  %v225_v37 = vcvt.s32.f32 %v161_v33 }
  0x21   :  { %v226_v36 = vcvt.s32.f32 %v162_v32 }
  0x22   :  { %776 = vperm.xlu1 %1833, %v690_v39   ;;  %771 = vperm.xlu0 %1832, %v689_v40   ;;  %v281_v40 = vpack.c.bf16 %v227_v38, %v225_v37 }
  0x23   :  { %408 = vmatmul.bf16.vlgmr.msra.gmra.mxu0 %v272_v41  ;;  %497 = vmatmul.bf16.vlgmr.msra.gmra.mxu1 %v273_v42  ;;  %v280_v39 = vpack.c.bf16 %v226_v36, %v224_v35  ;;  %v1727_v41 = vld [vmem:[%s2272_s3 + $0x38] sm:$0xff]  ;;  %v1726_v42 = vld [vmem:[%s2272_s3 + $0x30] sm:$0xff] }
  0x24   :  { %1267 = vmatpush.bf16.msra.mxu3 %v1727_v41 }
  0x25   :  { %781 = vperm.xlu2 %1834, %v691_v43   ;;  %v164_v43 = vunpack.c.2.s8 %v132_v29 }
  0x27   :  { %v228_v47 = vcvt.s32.f32 %v164_v43 }
  0x28   :  { %1268 = vmatpush.bf16.msra.mxu3 %v1726_v42  ;;  %v1706_v42 = vld [vmem:[%s2270_s1 + $0x10] sm:$0xff] }
  0x2a   :  { %791 = vperm.xlu1 %1833, %v693_v44   ;;  %786 = vperm.xlu0 %1832, %v692_v45   ;;  %v166_v44 = vunpack.c.3.s8 %v132_v29  ;;  %v165_v45 = vunpack.c.2.s8 %v133_v30 }
  0x2c   :  { %v230_v48 = vcvt.s32.f32 %v166_v44  ;;  %v229_v49 = vcvt.s32.f32 %v165_v45  ;;  %1269 = vmatpush.bf16.msra.mxu3 %v1725_v52 }
  0x2d   :  { %796 = vperm.xlu2 %1834, %v694_v54  }
  0x2e   :  { %v282_v53 = vpack.c.bf16 %v230_v48, %v228_v47  ;;  %v283_v54 = vpack.c.bf16 %v231_v50, %v229_v49 }
  0x32   :  { %806 = vperm.xlu1 %1833, %v696_v55   ;;  %801 = vperm.xlu0 %1832, %v695_v56   ;;  %v1734_v55 = vld [vmem:[%s2273_s4 + $0x30] sm:$0xff]  ;;  %v1724_v56 = vld [vmem:[%s2272_s3 + $0x20] sm:$0xff] }
  0x33   :  { %413 = vmatmul.bf16.gmra.mxu0 %v274_v57  ;;  %502 = vmatmul.bf16.gmra.mxu1 %v275_v58  ;;  %v134_v57 = vld [vmem:[%s2271_s0 + $0x30] sm:$0xff]  ;;  %v135_v58 = vld [vmem:[%s2271_s0 + $0x38] sm:$0xff] }
  0x34   :  { %1035 = vmatpush.bf16.msra.mxu2 %v1734_v55  ;;  %1270 = vmatpush.bf16.msra.mxu3 %v1724_v56  ;;  %v171_v0 = vunpack.c.1.s8 %v135_v58  ;;  %v174_v16 = vunpack.c.3.s8 %v134_v57  ;;  %v173_v17 = vunpack.c.2.s8 %v135_v58  ;;  %v175_v18 = vunpack.c.3.s8 %v135_v58 }
  0x35   :  { %811 = vperm.xlu2 %1834, %v697_v61   ;;  %v168_v61 = vunpack.c.0.s8 %v134_v57 }
  0x36   :  { %v235_v6 = vcvt.s32.f32 %v171_v0  ;;  %v238_v21 = vcvt.s32.f32 %v174_v16  ;;  %v237_v22 = vcvt.s32.f32 %v173_v17  ;;  %v239_v23 = vcvt.s32.f32 %v175_v18  ;;  %v138_v0 = vld [vmem:[%s2271_s0 + $0x50] sm:$0xff] }
  0x37   :  { %v232_v3 = vcvt.s32.f32 %v168_v61 }
  0x38   :  { %1036 = vmatpush.bf16.msra.mxu2 %v1733_v59  ;;  %1271 = vmatpush.bf16.msra.mxu3 %v1723_v60 }
  0x3a   :  { %821 = vperm.xlu1 %1833, %v699_v62   ;;  %816 = vperm.xlu0 %1832, %v698_v63   ;;  %v170_v62 = vunpack.c.1.s8 %v134_v57  ;;  %v169_v63 = vunpack.c.0.s8 %v135_v58 }
  0x3c   :  { %v234_v4 = vcvt.s32.f32 %v170_v62  ;;  %v233_v5 = vcvt.s32.f32 %v169_v63  ;;  %1037 = vmatpush.bf16.msra.mxu2 %v1732_v1  ;;  %1272 = vmatpush.bf16.msra.mxu3 %v1722_v2  ;;  %v1707_v1 = vld [vmem:[%s2270_s1 + $0x18] sm:$0xff] }
  0x3d   :  { %826 = vperm.xlu2 %1834, %v700_v8   ;;  %v1721_v8 = vld [vmem:[%s2272_s3 + $0x8] sm:$0xff]  ;;  %v139_v2 = vld [vmem:[%s2271_s0 + $0x58] sm:$0xff] }
  0x40   :  { %1038 = vmatpush.bf16.msra.mxu2 %v1731_v7  ;;  %1273 = vmatpush.bf16.msra.mxu3 %v1721_v8  ;;  %v187_v7 = vunpack.c.1.s8 %v139_v2 }
  0x42   :  { %836 = vperm.xlu1 %1833, %v702_v9   ;;  %831 = vperm.xlu0 %1832, %v701_v10   ;;  %v284_v9 = vpack.c.bf16 %v234_v4, %v232_v3  ;;  %v285_v10 = vpack.c.bf16 %v235_v6, %v233_v5  ;;  %v184_v3 = vunpack.c.0.s8 %v138_v0  ;;  %v186_v4 = vunpack.c.1.s8 %v138_v0 }
  0x43   :  { %418 = vmatmul.bf16.gmra.mxu0 %v276_v11  ;;  %507 = vmatmul.bf16.gmra.mxu1 %v277_v12  ;;  %v1730_v11 = vld [vmem:[%s2273_s4 + $0x10] sm:$0xff]  ;;  %v1720_v12 = vld [vmem:[%s2272_s3] sm:$0xff]  ;;  %v185_v6 = vunpack.c.0.s8 %v139_v2  ;;  %v251_v17 = vcvt.s32.f32 %v187_v7 }
  0x44   :  { %1039 = vmatpush.bf16.msra.mxu2 %v1730_v11  ;;  %1274 = vmatpush.bf16.msra.mxu3 %v1720_v12  ;;  %v248_v12 = vcvt.s32.f32 %v184_v3 }
  0x45   :  { %841 = vperm.xlu2 %1834, %v703_v13   ;;  %v1704_v13 = vld [vmem:[%s2270_s1] sm:$0xff]  ;;  %v249_v16 = vcvt.s32.f32 %v185_v6 }
  0x47   :  { %1275 = vmatmul.bf16.vlgmr.msra.gmra.mxu3 %v1704_v13  ;;  %v250_v13 = vcvt.s32.f32 %v186_v4 }
  0x4a   :  { %851 = vperm.xlu1 %1833, %v705_v14   ;;  %846 = vperm.xlu0 %1832, %v704_v15   ;;  %v1729_v14 = vld [vmem:[%s2273_s4 + $0x8] sm:$0xff]  ;;  %v172_v15 = vunpack.c.2.s8 %v134_v57 }
  0x4b   :  { %1040 = vmatpush.bf16.msra.mxu2 %v1729_v14 }
  0x4c   :  { %v236_v20 = vcvt.s32.f32 %v172_v15 }
  0x4d   :  { %856 = vperm.xlu2 %1834, %v706_v24  }
  0x4e   :  { %v286_v24 = vpack.c.bf16 %v238_v21, %v236_v20  ;;  %v292_v20 = vpack.c.bf16 %v250_v13, %v248_v12  ;;  %v293_v21 = vpack.c.bf16 %v251_v17, %v249_v16 }
  0x4f   :  { %1041 = vmatpush.bf16.msra.mxu2 %v1728_v19 }
  0x52   :  { %866 = vperm.xlu1 %1833, %v708_v25   ;;  %861 = vperm.xlu0 %1832, %v707_v26   ;;  %v287_v25 = vpack.c.bf16 %v239_v23, %v237_v22  ;;  %v136_v26 = vld [vmem:[%s2271_s0 + $0x40] sm:$0xff] }
  0x53   :  { %423 = vmatmul.bf16.gmra.mxu0 %v278_v27  ;;  %512 = vmatmul.bf16.gmra.mxu1 %v279_v28  ;;  %v137_v27 = vld [vmem:[%s2271_s0 + $0x48] sm:$0xff]  ;;  %v176_v29 = vunpack.c.0.s8 %v136_v26  ;;  %v178_v30 = vunpack.c.1.s8 %v136_v26  ;;  %v180_v43 = vunpack.c.2.s8 %v136_v26  ;;  %v182_v44 = vunpack.c.3.s8 %v136_v26 }
  0x54   :  { %v1705_v28 = vld [vmem:[%s2270_s1 + $0x8] sm:$0xff]  ;;  %v177_v31 = vunpack.c.0.s8 %v137_v27  ;;  %v179_v32 = vunpack.c.1.s8 %v137_v27  ;;  %v181_v46 = vunpack.c.2.s8 %v137_v27  ;;  %v183_v47 = vunpack.c.3.s8 %v137_v27 }
  0x55   :  { %v240_v33 = vcvt.s32.f32 %v176_v29  ;;  %v242_v34 = vcvt.s32.f32 %v178_v30  ;;  %v244_v52 = vcvt.s32.f32 %v180_v43  ;;  %v190_v26 = vunpack.c.3.s8 %v138_v0 }
  0x56   :  { %v241_v35 = vcvt.s32.f32 %v177_v31  ;;  %v243_v36 = vcvt.s32.f32 %v179_v32  ;;  %v245_v56 = vcvt.s32.f32 %v181_v46  ;;  %v247_v57 = vcvt.s32.f32 %v183_v47  ;;  %v1709_v46 = vld [vmem:[%s2270_s1 + $0x28] sm:$0xff] }
  0x57   :  { %1280 = vmatmul.bf16.gmra.mxu3 %v1705_v28  ;;  %v288_v38 = vpack.c.bf16 %v242_v34, %v240_v33  ;;  %v189_v28 = vunpack.c.2.s8 %v139_v2  ;;  %v191_v29 = vunpack.c.3.s8 %v139_v2  ;;  %v141_v47 = vld [vmem:[%s2271_s0 + $0x68] sm:$0xff] }
  0x58   :  { %v291_v61 = vpack.c.bf16 %v247_v57, %v245_v56 }
  0x5f   :  { %v732_v19 = vpop.permute.xlu2 %731 }
  0x63   :  { %428 = vmatmul.bf16.gmra.mxu0 %v280_v39  ;;  %517 = vmatmul.bf16.gmra.mxu1 %v281_v40  ;;  %v289_v39 = vpack.c.bf16 %v243_v36, %v241_v35  ;;  %v254_v35 = vcvt.s32.f32 %v190_v26 }
  0x67   :  { %1285 = vmatmul.bf16.gmra.mxu3 %v1706_v42  ;;  %v737_v33 = vpop.permute.xlu2 %736 }
  0x73   :  { %433 = vmatmul.bf16.gmra.mxu0 %v282_v53  ;;  %522 = vmatmul.bf16.gmra.mxu1 %v283_v54  ;;  %v246_v53 = vcvt.s32.f32 %v182_v44 }
  0x74   :  { %v712_v37 = vpop.permute.xlu0 %711  ;;  %v722_v59 = vpop.permute.xlu1 %721 }
  0x75   :  { %v290_v60 = vpack.c.bf16 %v246_v53, %v244_v52  ;;  %v195_v52 = vunpack.c.1.s8 %v141_v47 }
  0x77   :  { %1290 = vmatmul.bf16.gmra.mxu3 %v1707_v1 }
  0x7c   :  { %v717_v51 = vpop.permute.xlu0 %716  ;;  %v727_v11 = vpop.permute.xlu1 %726 }
  0x83   :  { %438 = vmatmul.bf16.gmra.mxu0 %v284_v9  ;;  %527 = vmatmul.bf16.gmra.mxu1 %v285_v10 }
  0x84   :  { %v747_v56 = vpop.permute.xlu1 %746  ;;  %v742_v57 = vpop.permute.xlu0 %741 }
  0x93   :  { %443 = vmatmul.bf16.gmra.mxu0 %v286_v24  ;;  %532 = vmatmul.bf16.gmra.mxu1 %v287_v25  ;;  %v1708_v24 = vld [vmem:[%s2270_s1 + $0x20] sm:$0xff]  ;;  %v188_v25 = vunpack.c.2.s8 %v138_v0 }
  0x94   :  { %1295 = vmatmul.bf16.gmra.mxu3 %v1708_v24 }
  0x95   :  { %v252_v34 = vcvt.s32.f32 %v188_v25 }
  0xa0   :  { %v409_v40 = vpop.f32.mrf.mxu0  ;;  %v498_v41 = vpop.f32.mrf.mxu1 }
  0xa1   :  { %v499_v45 = vadd.f32 %v498_v41, %v409_v40  ;;  %v294_v41 = vpack.c.bf16 %v254_v35, %v252_v34 }
  0xa3   :  { %448 = vmatmul.bf16.gmra.mxu0 %v288_v38  ;;  %537 = vmatmul.bf16.gmra.mxu1 %v289_v39  ;;  %v869_v54 = vmul.f32 %v712_v37, %v499_v45  ;;  %v253_v38 = vcvt.s32.f32 %v189_v28  ;;  %v255_v39 = vcvt.s32.f32 %v191_v29  ;;  %v140_v45 = vld [vmem:[%s2271_s0 + $0x60] sm:$0xff]  ;;  %v1711_v28 = vld [vmem:[%s2270_s1 + $0x38] sm:$0xff] }
  0xa4   :  { %1300 = vmatmul.bf16.gmra.mxu3 %v1709_v46  ;;  %v196_v6 = vunpack.c.2.s8 %v140_v45  ;;  %v198_v7 = vunpack.c.3.s8 %v140_v45  ;;  %v143_v29 = vld [vmem:[%s2271_s0 + $0x78] sm:$0xff] }
  0xa5   :  { %v295_v42 = vpack.c.bf16 %v255_v39, %v253_v38  ;;  %v203_v34 = vunpack.c.1.s8 %v143_v29  ;;  %v762_v38 = vpop.permute.xlu1 %761 }
  0xa6   :  { %v260_v16 = vcvt.s32.f32 %v196_v6  ;;  %v262_v17 = vcvt.s32.f32 %v198_v7 }
  0xa8   :  { %v411_v48 = vpop.f32.mrf.mxu0  ;;  %v500_v49 = vpop.f32.mrf.mxu1 }
  0xa9   :  { %v501_v50 = vadd.f32 %v500_v49, %v411_v48  ;;  %v192_v48 = vunpack.c.0.s8 %v140_v45  ;;  %v194_v49 = vunpack.c.1.s8 %v140_v45  ;;  %v267_v45 = vcvt.s32.f32 %v203_v34 }
  0xab   :  { %v870_v55 = vmul.f32 %v717_v51, %v501_v50  ;;  %v193_v51 = vunpack.c.0.s8 %v141_v47 }
  0xad   :  { %v901_v58 = vpack.c.bf16 %v870_v55, %v869_v54 }
  0xaf   :  { %1042 = vmatmul.bf16.vlgmr.msra.gmra.mxu2 %v901_v58  ;;  %v256_v58 = vcvt.s32.f32 %v192_v48 }
  0xb0   :  { %v414_v62 = vpop.f32.mrf.mxu0  ;;  %v503_v63 = vpop.f32.mrf.mxu1 }
  0xb1   :  { %v504_v5 = vadd.f32 %v503_v63, %v414_v62  ;;  %v257_v62 = vcvt.s32.f32 %v193_v51  ;;  %v259_v63 = vcvt.s32.f32 %v195_v52  ;;  %v1712_v51 = vld [vmem:[%s2270_s1 + $0x40] sm:$0xff] }
  0xb3   :  { %453 = vmatmul.bf16.gmra.mxu0 %v290_v60  ;;  %542 = vmatmul.bf16.gmra.mxu1 %v291_v61  ;;  %v871_v14 = vmul.f32 %v722_v59, %v504_v5  ;;  %v258_v59 = vcvt.s32.f32 %v194_v49  ;;  %v297_v2 = vpack.c.bf16 %v259_v63, %v257_v62  ;;  %v1710_v5 = vld [vmem:[%s2270_s1 + $0x30] sm:$0xff] }
  0xb4   :  { %1305 = vmatmul.bf16.gmra.mxu3 %v1710_v5 }
  0xb5   :  { %v296_v1 = vpack.c.bf16 %v258_v59, %v256_v58  ;;  %v777_v59 = vpop.permute.xlu1 %776 }
  0xb8   :  { %v416_v8 = vpop.f32.mrf.mxu0  ;;  %v505_v9 = vpop.f32.mrf.mxu1 }
  0xb9   :  { %v506_v10 = vadd.f32 %v505_v9, %v416_v8  ;;  %v197_v9 = vunpack.c.2.s8 %v141_v47 }
  0xbb   :  { %v872_v15 = vmul.f32 %v727_v11, %v506_v10  ;;  %v199_v10 = vunpack.c.3.s8 %v141_v47 }
  0xbd   :  { %v902_v18 = vpack.c.bf16 %v872_v15, %v871_v14  ;;  %v752_v14 = vpop.permute.xlu2 %751  ;;  %v757_v15 = vpop.permute.xlu0 %756 }
  0xbf   :  { %1047 = vmatmul.bf16.gmra.mxu2 %v902_v18 }
  0xc0   :  { %v419_v22 = vpop.f32.mrf.mxu0  ;;  %v508_v23 = vpop.f32.mrf.mxu1 }
  0xc1   :  { %v509_v27 = vadd.f32 %v508_v23, %v419_v22  ;;  %v298_v23 = vpack.c.bf16 %v262_v17, %v260_v16 }
  0xc3   :  { %458 = vmatmul.bf16.gmra.mxu0 %v292_v20  ;;  %547 = vmatmul.bf16.gmra.mxu1 %v293_v21  ;;  %v873_v36 = vmul.f32 %v732_v19, %v509_v27  ;;  %v261_v20 = vcvt.s32.f32 %v197_v9  ;;  %v263_v21 = vcvt.s32.f32 %v199_v10  ;;  %v142_v27 = vld [vmem:[%s2271_s0 + $0x70] sm:$0xff] }
  0xc4   :  { %1310 = vmatmul.bf16.gmra.mxu3 %v1711_v28  ;;  %v204_v52 = vunpack.c.2.s8 %v142_v27 }
  0xc5   :  { %v299_v24 = vpack.c.bf16 %v263_v21, %v261_v20  ;;  %v767_v39 = vpop.permute.xlu2 %766 }
  0xc6   :  { %v268_v62 = vcvt.s32.f32 %v204_v52 }
  0xc8   :  { %v421_v30 = vpop.f32.mrf.mxu0  ;;  %v510_v31 = vpop.f32.mrf.mxu1 }
  0xc9   :  { %v511_v32 = vadd.f32 %v510_v31, %v421_v30  ;;  %v200_v30 = vunpack.c.0.s8 %v142_v27  ;;  %v202_v31 = vunpack.c.1.s8 %v142_v27 }
  0xcb   :  { %v874_v37 = vmul.f32 %v737_v33, %v511_v32  ;;  %v201_v33 = vunpack.c.0.s8 %v143_v29 }
  0xcd   :  { %v903_v40 = vpack.c.bf16 %v874_v37, %v873_v36 }
  0xcf   :  { %1052 = vmatmul.bf16.gmra.mxu2 %v903_v40  ;;  %v264_v40 = vcvt.s32.f32 %v200_v30 }
  0xd0   :  { %v424_v43 = vpop.f32.mrf.mxu0  ;;  %v513_v44 = vpop.f32.mrf.mxu1 }
  0xd1   :  { %v514_v50 = vadd.f32 %v513_v44, %v424_v43  ;;  %v265_v44 = vcvt.s32.f32 %v201_v33 }
  0xd3   :  { %463 = vmatmul.bf16.gmra.mxu0 %v294_v41  ;;  %552 = vmatmul.bf16.gmra.mxu1 %v295_v42  ;;  %v875_v60 = vmul.f32 %v742_v57, %v514_v50  ;;  %v266_v41 = vcvt.s32.f32 %v202_v31  ;;  %v301_v48 = vpack.c.bf16 %v267_v45, %v265_v44  ;;  %v792_v31 = vpop.permute.xlu1 %791 }
  0xd4   :  { %1315 = vmatmul.bf16.gmra.mxu3 %v1712_v51 }
  0xd5   :  { %v300_v47 = vpack.c.bf16 %v266_v41, %v264_v40  ;;  %v1715_v40 = vld [vmem:[%s2270_s1 + $0x58] sm:$0xff] }
  0xd8   :  { %v426_v53 = vpop.f32.mrf.mxu0  ;;  %v515_v54 = vpop.f32.mrf.mxu1 }
  0xd9   :  { %v516_v55 = vadd.f32 %v515_v54, %v426_v53  ;;  %v206_v53 = vunpack.c.3.s8 %v142_v27 }
  0xdb   :  { %v876_v61 = vmul.f32 %v747_v56, %v516_v55  ;;  %v205_v55 = vunpack.c.2.s8 %v143_v29  ;;  %v207_v56 = vunpack.c.3.s8 %v143_v29  ;;  %v270_v63 = vcvt.s32.f32 %v206_v53 }
  0xdd   :  { %v904_v0 = vpack.c.bf16 %v876_v61, %v875_v60  ;;  %v772_v61 = vpop.permute.xlu0 %771  ;;  %v302_v6 = vpack.c.bf16 %v270_v63, %v268_v62 }
  0xdf   :  { %1057 = vmatmul.bf16.gmra.mxu2 %v904_v0  ;;  %v1276_v0 = vpop.f32.mrf.mxu3 }
  0xe0   :  { %v429_v3 = vpop.f32.mrf.mxu0  ;;  %v518_v4 = vpop.f32.mrf.mxu1 }
  0xe1   :  { %v519_v8 = vadd.f32 %v518_v4, %v429_v3  ;;  %v269_v3 = vcvt.s32.f32 %v205_v55  ;;  %v271_v4 = vcvt.s32.f32 %v207_v56 }
  0xe3   :  { %468 = vmatmul.bf16.gmra.mxu0 %v296_v1  ;;  %557 = vmatmul.bf16.gmra.mxu1 %v297_v2  ;;  %v877_v18 = vmul.f32 %v752_v14, %v519_v8  ;;  %v303_v7 = vpack.c.bf16 %v271_v4, %v269_v3 }
  0xe5   :  { %v787_v17 = vpop.permute.xlu0 %786 }
  0xe7   :  { %v1278_v10 = vpop.f32.mrf.mxu3 }
  0xe8   :  { %v431_v11 = vpop.f32.mrf.mxu0  ;;  %v520_v12 = vpop.f32.mrf.mxu1 }
  0xe9   :  { %v521_v13 = vadd.f32 %v520_v12, %v431_v11  ;;  %v1713_v11 = vld [vmem:[%s2270_s1 + $0x48] sm:$0xff] }
  0xea   :  { %1320 = vmatmul.bf16.gmra.mxu3 %v1713_v11 }
  0xeb   :  { %v878_v19 = vmul.f32 %v757_v15, %v521_v13  ;;  %v782_v15 = vpop.permute.xlu2 %781 }
  0xed   :  { %v905_v22 = vpack.c.bf16 %v878_v19, %v877_v18 }
  0xef   :  { %1062 = vmatmul.bf16.gmra.mxu2 %v905_v22  ;;  %v1281_v18 = vpop.f32.mrf.mxu3 }
  0xf0   :  { %v434_v25 = vpop.f32.mrf.mxu0  ;;  %v523_v26 = vpop.f32.mrf.mxu1 }
  0xf1   :  { %v524_v32 = vadd.f32 %v523_v26, %v434_v25  ;;  %v1714_v25 = vld [vmem:[%s2270_s1 + $0x50] sm:$0xff] }
  0xf3   :  { %473 = vmatmul.bf16.gmra.mxu0 %v298_v23  ;;  %562 = vmatmul.bf16.gmra.mxu1 %v299_v24  ;;  %v879_v42 = vmul.f32 %v762_v38, %v524_v32  ;;  %v797_v29 = vpop.permute.xlu2 %796 }
  0xf7   :  { %v1283_v24 = vpop.f32.mrf.mxu3 }
  0xf8   :  { %v436_v35 = vpop.f32.mrf.mxu0  ;;  %v525_v36 = vpop.f32.mrf.mxu1 }
  0xf9   :  { %v526_v37 = vadd.f32 %v525_v36, %v436_v35 }
  0xfa   :  { %1325 = vmatmul.bf16.gmra.mxu3 %v1714_v25 }
  0xfb   :  { %v880_v43 = vmul.f32 %v767_v39, %v526_v37 }
  0xfd   :  { %v906_v46 = vpack.c.bf16 %v880_v43, %v879_v42  ;;  %v2155_v43 = vld [vmem:[%s2274_s5] ss:$0 sm:$0xff] }
  0xff   :  { %1067 = vmatmul.bf16.gmra.mxu2 %v906_v46  ;;  %v2145_v32 = vpop.f32.mrf.mxu3  ;;  %v807_v46 = vpop.permute.xlu1 %806 }
 0x100   :  { %v439_v49 = vpop.f32.mrf.mxu0  ;;  %v528_v50 = vpop.f32.mrf.mxu1 }
 0x101   :  { %v529_v54 = vadd.f32 %v528_v50, %v439_v49 }
 0x103   :  { %478 = vmatmul.bf16.gmra.mxu0 %v300_v47  ;;  %567 = vmatmul.bf16.gmra.mxu1 %v301_v48  ;;  %v881_v1 = vmul.f32 %v772_v61, %v529_v54  ;;  %v802_v47 = vpop.permute.xlu0 %801 }
 0x107   :  { %v2147_v39 = vpop.f32.mrf.mxu3 }
 0x108   :  { %v441_v57 = vpop.f32.mrf.mxu0  ;;  %v530_v58 = vpop.f32.mrf.mxu1 }
 0x109   :  { %v531_v60 = vadd.f32 %v530_v58, %v441_v57 }
 0x10a   :  { %1330 = vmatmul.bf16.gmra.mxu3 %v1715_v40 }
 0x10b   :  { %v882_v2 = vmul.f32 %v777_v59, %v531_v60 }
 0x10d   :  { %v907_v5 = vpack.c.bf16 %v882_v2, %v881_v1 }
 0x10f   :  { %1072 = vmatmul.bf16.gmra.mxu2 %v907_v5  ;;  %v2157_v50 = vpop.f32.mrf.mxu3  ;;  %v812_v5 = vpop.permute.xlu2 %811 }
 0x110   :  { %v444_v8 = vpop.f32.mrf.mxu0  ;;  %v533_v9 = vpop.f32.mrf.mxu1 }
 0x111   :  { %v534_v12 = vadd.f32 %v533_v9, %v444_v8 }
 0x113   :  { %483 = vmatmul.bf16.gmra.mxu0 %v302_v6  ;;  %572 = vmatmul.bf16.gmra.mxu1 %v303_v7  ;;  %v883_v19 = vmul.f32 %v782_v15, %v534_v12  ;;  %v817_v6 = vpop.permute.xlu0 %816 }
 0x117   :  { %v2161_v63 = vpop.f32.mrf.mxu3 }
 0x118   :  { %v446_v13 = vpop.f32.mrf.mxu0  ;;  %v535_v14 = vpop.f32.mrf.mxu1 }
 0x119   :  { %v536_v16 = vadd.f32 %v535_v14, %v446_v13 }
 0x11b   :  { %v884_v20 = vmul.f32 %v787_v17, %v536_v16 }
 0x11d   :  { %v908_v21 = vpack.c.bf16 %v884_v20, %v883_v19 }
 0x11f   :  { %1077 = vmatmul.bf16.gmra.mxu2 %v908_v21  ;;  %v2169_v9 = vpop.f32.mrf.mxu3 }
 0x120   :  { %v449_v22 = vpop.f32.mrf.mxu0  ;;  %v538_v23 = vpop.f32.mrf.mxu1 }
 0x121   :  { %v539_v26 = vadd.f32 %v538_v23, %v449_v22  ;;  %v1717_v23 = vld [vmem:[%s2270_s1 + $0x68] sm:$0xff] }
 0x123   :  { %v885_v33 = vmul.f32 %v792_v31, %v539_v26 }
 0x127   :  { %v2173_v22 = vpop.f32.mrf.mxu3 }
 0x128   :  { %v451_v27 = vpop.f32.mrf.mxu0  ;;  %v540_v28 = vpop.f32.mrf.mxu1 }
 0x129   :  { %v541_v30 = vadd.f32 %v540_v28, %v451_v27  ;;  %v822_v28 = vpop.permute.xlu1 %821 }
 0x12b   :  { %v886_v34 = vmul.f32 %v797_v29, %v541_v30  ;;  %v827_v29 = vpop.permute.xlu2 %826 }
 0x12d   :  { %v909_v35 = vpack.c.bf16 %v886_v34, %v885_v33 }
 0x12f   :  { %1082 = vmatmul.bf16.gmra.mxu2 %v909_v35  ;;  %v2182_v33 = vpop.f32.mrf.mxu3 }
 0x130   :  { %v454_v36 = vpop.f32.mrf.mxu0  ;;  %v543_v37 = vpop.f32.mrf.mxu1 }
 0x131   :  { %v544_v41 = vadd.f32 %v543_v37, %v454_v36 }
 0x132   :  { %v1043_v38 = vpop.f32.mrf.mxu2 }
 0x133   :  { %v1277_v42 = vadd.f32 %v1276_v0, %v1043_v38  ;;  %v887_v51 = vmul.f32 %v802_v47, %v544_v41  ;;  %v1716_v0 = vld [vmem:[%s2270_s1 + $0x60] sm:$0xff] }
 0x134   :  { %1335 = vmatmul.bf16.gmra.mxu3 %v1716_v0 }
 0x135   :  { %v1360_v52 = vadd.f32 %v2155_v43, %v1277_v42 }
 0x137   :  { %v1392_v57 = vmax.f32 %v1360_v52, 0.0  ;;  %v2187_v47 = vpop.f32.mrf.mxu3 }
 0x138   :  { %v456_v44 = vpop.f32.mrf.mxu0  ;;  %v545_v45 = vpop.f32.mrf.mxu1 }
 0x139   :  { %v546_v48 = vadd.f32 %v545_v45, %v456_v44 }
 0x13a   :  { %v1045_v49 = vpop.f32.mrf.mxu2 }
 0x13b   :  { %v888_v53 = vmul.f32 %v807_v46, %v546_v48  ;;  %v1279_v54 = vadd.f32 %v1278_v10, %v1045_v49 }
 0x13d   :  { %v1361_v55 = vadd.f32 %v2155_v43, %v1279_v54  ;;  %v910_v56 = vpack.c.bf16 %v888_v53, %v887_v51  ;;  %v837_v53 = vpop.permute.xlu1 %836 }
 0x13f   :  { %v1393_v58 = vmax.f32 %v1361_v55, 0.0  ;;  %1087 = vmatmul.bf16.gmra.mxu2 %v910_v56  ;;  %v832_v55 = vpop.permute.xlu0 %831 }
 0x140   :  { %v459_v59 = vpop.f32.mrf.mxu0  ;;  %v548_v60 = vpop.f32.mrf.mxu1 }
 0x141   :  { %v1739_v61 = vpack.c.bf16 %v1393_v58, %v1392_v57  ;;  %v549_v1 = vadd.f32 %v548_v60, %v459_v59 }
 0x142   :  { %v1048_v62 = vpop.f32.mrf.mxu2 }
 0x143   :  { %1740 = vst [vmem:[%s2275_s6] sm:$0xff] %v1739_v61   ;;  %v1282_v2 = vadd.f32 %v1281_v18, %v1048_v62  ;;  %v889_v10 = vmul.f32 %v812_v5, %v549_v1  ;;  %v1306_v61 = vpop.f32.mrf.mxu3 }
 0x144   :  { %1340 = vmatmul.bf16.gmra.mxu3 %v1717_v23 }
 0x145   :  { %v1362_v11 = vadd.f32 %v2155_v43, %v1282_v2 }
 0x147   :  { %v1394_v16 = vmax.f32 %v1362_v11, 0.0 }
 0x148   :  { %v461_v3 = vpop.f32.mrf.mxu0  ;;  %v550_v4 = vpop.f32.mrf.mxu1 }
 0x149   :  { %v551_v7 = vadd.f32 %v550_v4, %v461_v3 }
 0x14a   :  { %v1050_v8 = vpop.f32.mrf.mxu2 }
 0x14b   :  { %v890_v12 = vmul.f32 %v817_v6, %v551_v7  ;;  %v1284_v13 = vadd.f32 %v1283_v24, %v1050_v8  ;;  %v1308_v6 = vpop.f32.mrf.mxu3 }
 0x14d   :  { %v1363_v14 = vadd.f32 %v2155_v43, %v1284_v13  ;;  %v911_v15 = vpack.c.bf16 %v890_v12, %v889_v10  ;;  %v842_v12 = vpop.permute.xlu2 %841 }
 0x14f   :  { %v1395_v17 = vmax.f32 %v1363_v14, 0.0  ;;  %1092 = vmatmul.bf16.gmra.mxu2 %v911_v15  ;;  %v847_v14 = vpop.permute.xlu0 %846 }
 0x150   :  { %v464_v18 = vpop.f32.mrf.mxu0  ;;  %v553_v19 = vpop.f32.mrf.mxu1 }
 0x151   :  { %v1744_v20 = vpack.c.bf16 %v1395_v17, %v1394_v16  ;;  %v554_v24 = vadd.f32 %v553_v19, %v464_v18 }
 0x152   :  { %v1053_v21 = vpop.f32.mrf.mxu2 }
 0x153   :  { %1816 = vst [vmem:[%s2275_s6 + $0x8] sm:$0xff] %v1744_v20   ;;  %v1287_v25 = vadd.f32 %v2145_v32, %v1053_v21  ;;  %v891_v34 = vmul.f32 %v822_v28, %v554_v24 }
 0x155   :  { %v1364_v35 = vadd.f32 %v2155_v43, %v1287_v25 }
 0x157   :  { %v1396_v41 = vmax.f32 %v1364_v35, 0.0  ;;  %v857_v35 = vpop.permute.xlu2 %856 }
 0x158   :  { %v466_v26 = vpop.f32.mrf.mxu0  ;;  %v555_v27 = vpop.f32.mrf.mxu1 }
 0x159   :  { %v556_v30 = vadd.f32 %v555_v27, %v466_v26 }
 0x15a   :  { %v1055_v31 = vpop.f32.mrf.mxu2 }
 0x15b   :  { %v892_v36 = vmul.f32 %v827_v29, %v556_v30  ;;  %v1289_v37 = vadd.f32 %v2147_v39, %v1055_v31  ;;  %v1718_v39 = vld [vmem:[%s2270_s1 + $0x70] sm:$0xff] }
 0x15c   :  { %1345 = vmatmul.bf16.gmra.mxu3 %v1718_v39 }
 0x15d   :  { %v1365_v38 = vadd.f32 %v2155_v43, %v1289_v37  ;;  %v912_v40 = vpack.c.bf16 %v892_v36, %v891_v34  ;;  %v852_v34 = vpop.permute.xlu1 %851 }
 0x15f   :  { %v1397_v32 = vmax.f32 %v1365_v38, 0.0  ;;  %1097 = vmatmul.bf16.gmra.mxu2 %v912_v40 }
 0x160   :  { %v469_v42 = vpop.f32.mrf.mxu0  ;;  %v558_v44 = vpop.f32.mrf.mxu1 }
 0x161   :  { %v1749_v45 = vpack.c.bf16 %v1397_v32, %v1396_v41  ;;  %v559_v48 = vadd.f32 %v558_v44, %v469_v42 }
 0x162   :  { %v1058_v46 = vpop.f32.mrf.mxu2 }
 0x163   :  { %1817 = vst [vmem:[%s2275_s6 + $0x10] sm:$0xff] %v1749_v45   ;;  %v1292_v49 = vadd.f32 %v2157_v50, %v1058_v46  ;;  %v893_v57 = vmul.f32 %v832_v55, %v559_v48 }
 0x165   :  { %v1366_v58 = vadd.f32 %v2155_v43, %v1292_v49 }
 0x167   :  { %v1398_v1 = vmax.f32 %v1366_v58, 0.0  ;;  %v862_v58 = vpop.permute.xlu0 %861 }
 0x168   :  { %v471_v51 = vpop.f32.mrf.mxu0  ;;  %v560_v52 = vpop.f32.mrf.mxu1 }
 0x169   :  { %v561_v54 = vadd.f32 %v560_v52, %v471_v51 }
 0x16a   :  { %v1060_v56 = vpop.f32.mrf.mxu2 }
 0x16b   :  { %v894_v59 = vmul.f32 %v837_v53, %v561_v54  ;;  %v1294_v60 = vadd.f32 %v2161_v63, %v1060_v56  ;;  %v1719_v63 = vld [vmem:[%s2270_s1 + $0x78] sm:$0xff] }
 0x16c   :  { %1350 = vmatmul.bf16.gmra.mxu3 %v1719_v63 }
 0x16d   :  { %v1367_v62 = vadd.f32 %v2155_v43, %v1294_v60  ;;  %v913_v0 = vpack.c.bf16 %v894_v59, %v893_v57 }
 0x16f   :  { %v1399_v2 = vmax.f32 %v1367_v62, 0.0  ;;  %1102 = vmatmul.bf16.gmra.mxu2 %v913_v0 }
 0x170   :  { %v474_v50 = vpop.f32.mrf.mxu0  ;;  %v563_v3 = vpop.f32.mrf.mxu1 }
 0x171   :  { %v1754_v4 = vpack.c.bf16 %v1399_v2, %v1398_v1  ;;  %v564_v7 = vadd.f32 %v563_v3, %v474_v50 }
 0x172   :  { %v1063_v5 = vpop.f32.mrf.mxu2 }
 0x173   :  { %1818 = vst [vmem:[%s2275_s6 + $0x18] sm:$0xff] %v1754_v4   ;;  %v1297_v8 = vadd.f32 %v2169_v9, %v1063_v5  ;;  %v895_v16 = vmul.f32 %v842_v12, %v564_v7  ;;  %v1311_v9 = vpop.f32.mrf.mxu3 }
 0x175   :  { %v1368_v17 = vadd.f32 %v2155_v43, %v1297_v8 }
 0x177   :  { %v1400_v23 = vmax.f32 %v1368_v17, 0.0 }
 0x178   :  { %v476_v10 = vpop.f32.mrf.mxu0  ;;  %v565_v11 = vpop.f32.mrf.mxu1 }
 0x179   :  { %v566_v13 = vadd.f32 %v565_v11, %v476_v10 }
 0x17a   :  { %v1065_v15 = vpop.f32.mrf.mxu2 }
 0x17b   :  { %v896_v18 = vmul.f32 %v847_v14, %v566_v13  ;;  %v1299_v19 = vadd.f32 %v2173_v22, %v1065_v15  ;;  %v1313_v38 = vpop.f32.mrf.mxu3 }
 0x17d   :  { %v1369_v20 = vadd.f32 %v2155_v43, %v1299_v19  ;;  %v914_v21 = vpack.c.bf16 %v896_v18, %v895_v16 }
 0x17f   :  { %v1401_v24 = vmax.f32 %v1369_v20, 0.0  ;;  %1107 = vmatmul.bf16.gmra.mxu2 %v914_v21 }
 0x180   :  { %v479_v25 = vpop.f32.mrf.mxu0  ;;  %v568_v26 = vpop.f32.mrf.mxu1 }
 0x181   :  { %v1759_v27 = vpack.c.bf16 %v1401_v24, %v1400_v23  ;;  %v569_v29 = vadd.f32 %v568_v26, %v479_v25 }
 0x182   :  { %v1068_v28 = vpop.f32.mrf.mxu2 }
 0x183   :  { %1819 = vst [vmem:[%s2275_s6 + $0x20] sm:$0xff] %v1759_v27   ;;  %v1302_v30 = vadd.f32 %v2182_v33, %v1068_v28  ;;  %v897_v40 = vmul.f32 %v852_v34, %v569_v29  ;;  %v1316_v52 = vpop.f32.mrf.mxu3 }
 0x185   :  { %v1370_v41 = vadd.f32 %v2155_v43, %v1302_v30 }
 0x187   :  { %v1402_v46 = vmax.f32 %v1370_v41, 0.0 }
 0x188   :  { %v481_v31 = vpop.f32.mrf.mxu0  ;;  %v570_v22 = vpop.f32.mrf.mxu1 }
 0x189   :  { %v571_v36 = vadd.f32 %v570_v22, %v481_v31 }
 0x18a   :  { %v1070_v37 = vpop.f32.mrf.mxu2 }
 0x18b   :  { %v898_v32 = vmul.f32 %v857_v35, %v571_v36  ;;  %v1304_v42 = vadd.f32 %v2187_v47, %v1070_v37  ;;  %v867_v47 = vpop.permute.xlu1 %866  ;;  %v1318_v3 = vpop.f32.mrf.mxu3 }
 0x18d   :  { %v1371_v44 = vadd.f32 %v2155_v43, %v1304_v42  ;;  %v915_v45 = vpack.c.bf16 %v898_v32, %v897_v40 }
 0x18f   :  { %v1403_v39 = vmax.f32 %v1371_v44, 0.0  ;;  %1112 = vmatmul.bf16.gmra.mxu2 %v915_v45 }
 0x190   :  { %v484_v33 = vpop.f32.mrf.mxu0  ;;  %v573_v48 = vpop.f32.mrf.mxu1 }
 0x191   :  { %v1764_v49 = vpack.c.bf16 %v1403_v39, %v1402_v46  ;;  %v574_v53 = vadd.f32 %v573_v48, %v484_v33 }
 0x192   :  { %v1073_v51 = vpop.f32.mrf.mxu2 }
 0x193   :  { %1820 = vst [vmem:[%s2275_s6 + $0x28] sm:$0xff] %v1764_v49   ;;  %v1307_v54 = vadd.f32 %v1306_v61, %v1073_v51  ;;  %v899_v60 = vmul.f32 %v862_v58, %v574_v53  ;;  %v1321_v8 = vpop.f32.mrf.mxu3 }
 0x195   :  { %v1372_v62 = vadd.f32 %v2155_v43, %v1307_v54 }
 0x197   :  { %v1404_v4 = vmax.f32 %v1372_v62, 0.0 }
 0x198   :  { %v486_v55 = vpop.f32.mrf.mxu0  ;;  %v575_v56 = vpop.f32.mrf.mxu1 }
 0x199   :  { %v576_v57 = vadd.f32 %v575_v56, %v486_v55 }
 0x19a   :  { %v1075_v59 = vpop.f32.mrf.mxu2 }
 0x19b   :  { %v900_v0 = vmul.f32 %v867_v47, %v576_v57  ;;  %v1309_v1 = vadd.f32 %v1308_v6, %v1075_v59  ;;  %v1323_v17 = vpop.f32.mrf.mxu3 }
 0x19d   :  { %v1373_v2 = vadd.f32 %v2155_v43, %v1309_v1  ;;  %v916_v50 = vpack.c.bf16 %v900_v0, %v899_v60 }
 0x19f   :  { %v1405_v5 = vmax.f32 %v1373_v2, 0.0  ;;  %1117 = vmatmul.bf16.gmra.mxu2 %v916_v50 }
 0x1a1   :  { %v1769_v63 = vpack.c.bf16 %v1405_v5, %v1404_v4 }
 0x1a2   :  { %v1078_v61 = vpop.f32.mrf.mxu2 }
 0x1a3   :  { %1821 = vst [vmem:[%s2275_s6 + $0x30] sm:$0xff] %v1769_v63   ;;  %v1312_v7 = vadd.f32 %v1311_v9, %v1078_v61  ;;  %v1326_v23 = vpop.f32.mrf.mxu3 }
 0x1a5   :  { %v1374_v11 = vadd.f32 %v2155_v43, %v1312_v7 }
 0x1a7   :  { %v1406_v13 = vmax.f32 %v1374_v11, 0.0 }
 0x1aa   :  { %v1080_v10 = vpop.f32.mrf.mxu2 }
 0x1ab   :  { %v1314_v12 = vadd.f32 %v1313_v38, %v1080_v10  ;;  %v1328_v28 = vpop.f32.mrf.mxu3 }
 0x1ad   :  { %v1375_v6 = vadd.f32 %v2155_v43, %v1314_v12 }
 0x1af   :  { %v1407_v14 = vmax.f32 %v1375_v6, 0.0 }
 0x1b1   :  { %v1774_v15 = vpack.c.bf16 %v1407_v14, %v1406_v13 }
 0x1b2   :  { %v1083_v16 = vpop.f32.mrf.mxu2 }
 0x1b3   :  { %1822 = vst [vmem:[%s2275_s6 + $0x38] sm:$0xff] %v1774_v15   ;;  %v1317_v18 = vadd.f32 %v1316_v52, %v1083_v16  ;;  %v1331_v37 = vpop.f32.mrf.mxu3 }
 0x1b5   :  { %v1376_v20 = vadd.f32 %v2155_v43, %v1317_v18 }
 0x1b7   :  { %v1408_v9 = vmax.f32 %v1376_v20, 0.0 }
 0x1ba   :  { %v1085_v19 = vpop.f32.mrf.mxu2 }
 0x1bb   :  { %v1319_v21 = vadd.f32 %v1318_v3, %v1085_v19  ;;  %v1333_v42 = vpop.f32.mrf.mxu3 }
 0x1bd   :  { %v1377_v24 = vadd.f32 %v2155_v43, %v1319_v21 }
 0x1bf   :  { %v1409_v25 = vmax.f32 %v1377_v24, 0.0 }
 0x1c1   :  { %v1779_v26 = vpack.c.bf16 %v1409_v25, %v1408_v9 }
 0x1c2   :  { %v1088_v27 = vpop.f32.mrf.mxu2 }
 0x1c3   :  { %1823 = vst [vmem:[%s2275_s6 + $0x40] sm:$0xff] %v1779_v26   ;;  %v1322_v29 = vadd.f32 %v1321_v8, %v1088_v27  ;;  %v1336_v51 = vpop.f32.mrf.mxu3 }
 0x1c5   :  { %v1378_v31 = vadd.f32 %v2155_v43, %v1322_v29 }
 0x1c7   :  { %v1410_v35 = vmax.f32 %v1378_v31, 0.0 }
 0x1ca   :  { %v1090_v30 = vpop.f32.mrf.mxu2 }
 0x1cb   :  { %v1324_v22 = vadd.f32 %v1323_v17, %v1090_v30  ;;  %v1338_v47 = vpop.f32.mrf.mxu3 }
 0x1cd   :  { %v1379_v34 = vadd.f32 %v2155_v43, %v1324_v22 }
 0x1cf   :  { %v1411_v36 = vmax.f32 %v1379_v34, 0.0 }
 0x1d1   :  { %v1784_v38 = vpack.c.bf16 %v1411_v36, %v1410_v35 }
 0x1d2   :  { %v1093_v40 = vpop.f32.mrf.mxu2 }
 0x1d3   :  { %1824 = vst [vmem:[%s2275_s6 + $0x48] sm:$0xff] %v1784_v38   ;;  %v1327_v41 = vadd.f32 %v1326_v23, %v1093_v40  ;;  %v1341_v0 = vpop.f32.mrf.mxu3 }
 0x1d5   :  { %v1380_v44 = vadd.f32 %v2155_v43, %v1327_v41 }
 0x1d7   :  { %v1412_v39 = vmax.f32 %v1380_v44, 0.0 }
 0x1da   :  { %v1095_v32 = vpop.f32.mrf.mxu2 }
 0x1db   :  { %v1329_v45 = vadd.f32 %v1328_v28, %v1095_v32  ;;  %v1343_v7 = vpop.f32.mrf.mxu3 }
 0x1dd   :  { %v1381_v46 = vadd.f32 %v2155_v43, %v1329_v45 }
 0x1df   :  { %v1413_v33 = vmax.f32 %v1381_v46, 0.0 }
 0x1e1   :  { %v1789_v48 = vpack.c.bf16 %v1413_v33, %v1412_v39 }
 0x1e2   :  { %v1098_v49 = vpop.f32.mrf.mxu2 }
 0x1e3   :  { %1825 = vst [vmem:[%s2275_s6 + $0x50] sm:$0xff] %v1789_v48   ;;  %v1332_v52 = vadd.f32 %v1331_v37, %v1098_v49  ;;  %v1346_v6 = vpop.f32.mrf.mxu3 }
 0x1e5   :  { %v1382_v54 = vadd.f32 %v2155_v43, %v1332_v52 }
 0x1e7   :  { %v1414_v57 = vmax.f32 %v1382_v54, 0.0 }
 0x1ea   :  { %v1100_v53 = vpop.f32.mrf.mxu2 }
 0x1eb   :  { %v1334_v55 = vadd.f32 %v1333_v42, %v1100_v53  ;;  %v1348_v18 = vpop.f32.mrf.mxu3 }
 0x1ed   :  { %v1383_v56 = vadd.f32 %v2155_v43, %v1334_v55 }
 0x1ef   :  { %v1415_v58 = vmax.f32 %v1383_v56, 0.0 }
 0x1f1   :  { %v1794_v59 = vpack.c.bf16 %v1415_v58, %v1414_v57 }
 0x1f2   :  { %v1103_v60 = vpop.f32.mrf.mxu2 }
 0x1f3   :  { %1826 = vst [vmem:[%s2275_s6 + $0x58] sm:$0xff] %v1794_v59   ;;  %v1337_v62 = vadd.f32 %v1336_v51, %v1103_v60  ;;  %v1351_v26 = vpop.f32.mrf.mxu3 }
 0x1f5   :  { %v1384_v2 = vadd.f32 %v2155_v43, %v1337_v62 }
 0x1f7   :  { %v1416_v4 = vmax.f32 %v1384_v2, 0.0 }
 0x1fa   :  { %v1105_v1 = vpop.f32.mrf.mxu2 }
 0x1fb   :  { %v1339_v50 = vadd.f32 %v1338_v47, %v1105_v1  ;;  %v1353_v30 = vpop.f32.mrf.mxu3 }
 0x1fd   :  { %v1385_v3 = vadd.f32 %v2155_v43, %v1339_v50 }
 0x1ff   :  { %v1417_v5 = vmax.f32 %v1385_v3, 0.0 }
 0x201   :  { %v1799_v63 = vpack.c.bf16 %v1417_v5, %v1416_v4 }
 0x202   :  { %v1108_v61 = vpop.f32.mrf.mxu2 }
 0x203   :  { %1827 = vst [vmem:[%s2275_s6 + $0x60] sm:$0xff] %v1799_v63   ;;  %v1342_v8 = vadd.f32 %v1341_v0, %v1108_v61 }
 0x205   :  { %v1386_v11 = vadd.f32 %v2155_v43, %v1342_v8 }
 0x207   :  { %v1418_v14 = vmax.f32 %v1386_v11, 0.0 }
 0x20a   :  { %v1110_v10 = vpop.f32.mrf.mxu2 }
 0x20b   :  { %v1344_v12 = vadd.f32 %v1343_v7, %v1110_v10 }
 0x20d   :  { %v1387_v13 = vadd.f32 %v2155_v43, %v1344_v12 }
 0x20f   :  { %v1419_v15 = vmax.f32 %v1387_v13, 0.0 }
 0x211   :  { %v1804_v16 = vpack.c.bf16 %v1419_v15, %v1418_v14 }
 0x212   :  { %v1113_v17 = vpop.f32.mrf.mxu2 }
 0x213   :  { %1828 = vst [vmem:[%s2275_s6 + $0x68] sm:$0xff] %v1804_v16   ;;  %v1347_v19 = vadd.f32 %v1346_v6, %v1113_v17 }
 0x215   :  { %v1388_v21 = vadd.f32 %v2155_v43, %v1347_v19 }
 0x217   :  { %v1420_v9 = vmax.f32 %v1388_v21, 0.0 }
 0x21a   :  { %v1115_v20 = vpop.f32.mrf.mxu2 }
 0x21b   :  { %v1349_v23 = vadd.f32 %v1348_v18, %v1115_v20 }
 0x21d   :  { %v1389_v24 = vadd.f32 %v2155_v43, %v1349_v23 }
 0x21f   :  { %v1421_v25 = vmax.f32 %v1389_v24, 0.0 }
 0x221   :  { %v1809_v27 = vpack.c.bf16 %v1421_v25, %v1420_v9 }
 0x222   :  { %v1118_v28 = vpop.f32.mrf.mxu2 }
 0x223   :  { %1829 = vst [vmem:[%s2275_s6 + $0x70] sm:$0xff] %v1809_v27   ;;  %v1352_v29 = vadd.f32 %v1351_v26, %v1118_v28 }
 0x225   :  { %v1390_v22 = vadd.f32 %v2155_v43, %v1352_v29 }
 0x227   :  { %v1422_v36 = vmax.f32 %v1390_v22, 0.0 }
 0x22a   :  { %v1120_v31 = vpop.f32.mrf.mxu2 }
 0x22b   :  { %v1354_v34 = vadd.f32 %v1353_v30, %v1120_v31 }
 0x22d   :  { %v1391_v35 = vadd.f32 %v2155_v43, %v1354_v34 }
 0x22f   :  { %v1423_v37 = vmax.f32 %v1391_v35, 0.0 }
 0x231   :  { %v1814_v38 = vpack.c.bf16 %v1423_v37, %v1422_v36 }
 0x233   :  { %1830 = vst [vmem:[%s2275_s6 + $0x78] sm:$0xff] %v1814_v38  }

</bundles_post_ra>
